<compile_context>
chip_gen: v7x
topology: tpu7x:2x2x1
jax: 0.10.0
libtpu: 0.0.40
codegen_flags: <defaults>
</compile_context>

<pallas_src>
import jax
import jax.numpy as jnp
from jax.experimental import pallas as pl
from jax.experimental.pallas import tpu as pltpu


def _mlp_kernel(s_ref, ns_ref, w1a_ref, w1b_ref, b1_ref,
                w2_ref, b2_ref, w3_ref, b3_ref, out_ref):
    # Whole problem (~3 MB in bf16) fits in VMEM -> single grid-less invocation,
    # all three layers fused on the MXU with no inter-layer HBM traffic.
    # fc1 with fused concat: [s | ns] @ w1  ==  s @ w1[:D] + ns @ w1[D:]
    h1 = jnp.dot(s_ref[...], w1a_ref[...], preferred_element_type=jnp.float32)
    h1 = h1 + jnp.dot(ns_ref[...], w1b_ref[...], preferred_element_type=jnp.float32)
    h1 = jnp.maximum(h1 + b1_ref[...], 0.0)

    h2 = jnp.dot(h1.astype(jnp.bfloat16), w2_ref[...],
                 preferred_element_type=jnp.float32) + b2_ref[...]
    h2 = jnp.maximum(h2, 0.0)

    logits = jnp.dot(h2.astype(jnp.bfloat16), w3_ref[...],
                     preferred_element_type=jnp.float32) + b3_ref[...]
    out_ref[...] = logits.astype(out_ref.dtype)


def inverse_model_forward(state, next_state, params):
    """Forward pass. params = (w1, b1, w2, b2, w3, b3) with w_i in [in, out] layout."""
    w1, b1, w2, b2, w3, b3 = params
    D = state.shape[1]
    B = state.shape[0]
    A = w3.shape[1]

    # bf16 weight/activation stream (HBM-BW bound kernel); f32 biases + f32 accumulation.
    bf = jnp.bfloat16
    s_bf = state.astype(bf)
    ns_bf = next_state.astype(bf)
    w1a = w1[:D].astype(bf)   # rows multiplying `state`
    w1b = w1[D:].astype(bf)   # rows multiplying `next_state`
    w2_bf = w2.astype(bf)
    w3_bf = w3.astype(bf)

    def full_spec(arr):
        return pl.BlockSpec(arr.shape, lambda *_: (0,) * arr.ndim)

    args = (s_bf, ns_bf, w1a, w1b, b1, w2_bf, b2, w3_bf, b3)

    # TODO(synk): for repeated calls with fixed weights, amortize the ~2.3 MB weight DMA
    # (larger batches per call or cross-pallas_call weight prefetch).
    return pl.pallas_call(
        _mlp_kernel,
        out_shape=jax.ShapeDtypeStruct((B, A), jnp.float32),
        in_specs=[full_spec(a) for a in args],
        out_specs=pl.BlockSpec((B, A), lambda *_: (0, 0)),
        compiler_params=pltpu.CompilerParams(vmem_limit_bytes=16 << 20),
    )(*args)


def init_params(key, input_shape, num_actions):
    """Deterministic init matching nn.Linear's U(-1/sqrt(fan_in), 1/sqrt(fan_in))."""
    dims = [(2 * input_shape, 2000), (2000, 500), (500, num_actions)]
    params = []
    for (fan_in, fan_out) in dims:
        key, kw, kb = jax.random.split(key, 3)
        bound = 1.0 / jnp.sqrt(float(fan_in))
        w = jax.random.uniform(kw, (fan_in, fan_out), jnp.float32, -bound, bound)
        b = jax.random.uniform(kb, (1, fan_out), jnp.float32, -bound, bound)
        params += [w, b]
    return tuple(params)


if __name__ == "__main__":
    key = jax.random.PRNGKey(0)
    batch = 4
    input_shape = 32
    num_actions = 8

    k1, k2, kp = jax.random.split(key, 3)
    state = jax.random.normal(k1, (batch, input_shape), jnp.float32)
    next_state = jax.random.normal(k2, (batch, input_shape), jnp.float32)
    params = init_params(kp, input_shape, num_actions)

    logits = inverse_model_forward(state, next_state, params)
    jax.block_until_ready(logits)
    assert logits.shape == (batch, num_actions)

    # Reference 1: plain-JAX with the same bf16 weight/activation casts (tight tolerance).
    w1, b1, w2, b2, w3, b3 = params
    bf = jnp.bfloat16
    D = input_shape
    h1 = (jnp.dot(state.astype(bf), w1[:D].astype(bf), preferred_element_type=jnp.float32)
          + jnp.dot(next_state.astype(bf), w1[D:].astype(bf), preferred_element_type=jnp.float32)
          + b1)
    h1 = jnp.maximum(h1, 0.0)
    h2 = jnp.maximum(jnp.dot(h1.astype(bf), w2.astype(bf),
                             preferred_element_type=jnp.float32) + b2, 0.0)
    ref_bf = jnp.dot(h2.astype(bf), w3.astype(bf),
                     preferred_element_type=jnp.float32) + b3
    assert jnp.allclose(logits, ref_bf, atol=2e-2, rtol=2e-2)

    # Reference 2: full-precision f32 reference (looser tolerance — bf16 weight stream).
    x = jnp.concatenate([state, next_state], axis=1)
    ref_f32 = jnp.maximum(x @ w1 + b1, 0.0)
    ref_f32 = jnp.maximum(ref_f32 @ w2 + b2, 0.0)
    ref_f32 = ref_f32 @ w3 + b3
    assert jnp.allclose(logits, ref_f32, atol=1e-1, rtol=1e-1)

    print("KERNEL_OK")
</pallas_src>

<mosaic_0001>
module attributes {stable_mosaic.version = 11 : i64} {
  func.func @_mlp_kernel(%arg0: memref<4x32xbf16, #tpu.memory_space<vmem>>, %arg1: memref<4x32xbf16, #tpu.memory_space<vmem>>, %arg2: memref<32x2000xbf16, #tpu.memory_space<vmem>>, %arg3: memref<32x2000xbf16, #tpu.memory_space<vmem>>, %arg4: memref<1x2000xf32, #tpu.memory_space<vmem>>, %arg5: memref<2000x500xbf16, #tpu.memory_space<vmem>>, %arg6: memref<1x500xf32, #tpu.memory_space<vmem>>, %arg7: memref<500x8xbf16, #tpu.memory_space<vmem>>, %arg8: memref<1x8xf32, #tpu.memory_space<vmem>>, %arg9: memref<4x8xf32, #tpu.memory_space<vmem>>) attributes {dimension_semantics = [], scalar_prefetch = 0 : i64, scratch_operands = 0 : i64, tpu.core_type = #tpu.core_type<tc>} {
    %c0 = arith.constant 0 : index
    %c0_0 = arith.constant 0 : index
    %0 = vector.load %arg0[%c0, %c0_0] : memref<4x32xbf16, #tpu.memory_space<vmem>>, vector<4x32xbf16>
    %c0_1 = arith.constant 0 : index
    %c0_2 = arith.constant 0 : index
    %1 = vector.load %arg2[%c0_1, %c0_2] : memref<32x2000xbf16, #tpu.memory_space<vmem>>, vector<32x2000xbf16>
    %cst = arith.constant dense<0.000000e+00> : vector<4x2000xf32>
    %2 = tpu.matmul %0, %1, %cst {dimension_numbers = #tpu.dot_dimension_numbers<[1], [0], [0], [1], [0, 0, 1, 1], [], []>} : vector<4x32xbf16>, vector<32x2000xbf16>, vector<4x2000xf32> -> vector<4x2000xf32>
    %c0_3 = arith.constant 0 : index
    %c0_4 = arith.constant 0 : index
    %3 = vector.load %arg1[%c0_3, %c0_4] : memref<4x32xbf16, #tpu.memory_space<vmem>>, vector<4x32xbf16>
    %c0_5 = arith.constant 0 : index
    %c0_6 = arith.constant 0 : index
    %4 = vector.load %arg3[%c0_5, %c0_6] : memref<32x2000xbf16, #tpu.memory_space<vmem>>, vector<32x2000xbf16>
    %cst_7 = arith.constant dense<0.000000e+00> : vector<4x2000xf32>
    %5 = tpu.matmul %3, %4, %cst_7 {dimension_numbers = #tpu.dot_dimension_numbers<[1], [0], [0], [1], [0, 0, 1, 1], [], []>} : vector<4x32xbf16>, vector<32x2000xbf16>, vector<4x2000xf32> -> vector<4x2000xf32>
    %6 = arith.addf %2, %5 : vector<4x2000xf32>
    %c0_8 = arith.constant 0 : index
    %c0_9 = arith.constant 0 : index
    %7 = vector.load %arg4[%c0_8, %c0_9] : memref<1x2000xf32, #tpu.memory_space<vmem>>, vector<1x2000xf32>
    %8 = vector.broadcast %7 : vector<1x2000xf32> to vector<4x2000xf32>
    %9 = arith.addf %6, %8 : vector<4x2000xf32>
    %cst_10 = arith.constant 0.000000e+00 : f32
    %10 = vector.broadcast %cst_10 : f32 to vector<4x2000xf32>
    %11 = arith.maximumf %9, %10 : vector<4x2000xf32>
    %12 = arith.truncf %11 : vector<4x2000xf32> to vector<4x2000xbf16>
    %c0_11 = arith.constant 0 : index
    %c0_12 = arith.constant 0 : index
    %13 = vector.load %arg5[%c0_11, %c0_12] : memref<2000x500xbf16, #tpu.memory_space<vmem>>, vector<2000x500xbf16>
    %cst_13 = arith.constant dense<0.000000e+00> : vector<4x500xf32>
    %14 = tpu.matmul %12, %13, %cst_13 {dimension_numbers = #tpu.dot_dimension_numbers<[1], [0], [0], [1], [0, 0, 1, 1], [], []>} : vector<4x2000xbf16>, vector<2000x500xbf16>, vector<4x500xf32> -> vector<4x500xf32>
    %c0_14 = arith.constant 0 : index
    %c0_15 = arith.constant 0 : index
    %15 = vector.load %arg6[%c0_14, %c0_15] : memref<1x500xf32, #tpu.memory_space<vmem>>, vector<1x500xf32>
    %16 = vector.broadcast %15 : vector<1x500xf32> to vector<4x500xf32>
    %17 = arith.addf %14, %16 : vector<4x500xf32>
    %cst_16 = arith.constant 0.000000e+00 : f32
    %18 = vector.broadcast %cst_16 : f32 to vector<4x500xf32>
    %19 = arith.maximumf %17, %18 : vector<4x500xf32>
    %20 = arith.truncf %19 : vector<4x500xf32> to vector<4x500xbf16>
    %c0_17 = arith.constant 0 : index
    %c0_18 = arith.constant 0 : index
    %21 = vector.load %arg7[%c0_17, %c0_18] : memref<500x8xbf16, #tpu.memory_space<vmem>>, vector<500x8xbf16>
    %cst_19 = arith.constant dense<0.000000e+00> : vector<4x8xf32>
    %22 = tpu.matmul %20, %21, %cst_19 {dimension_numbers = #tpu.dot_dimension_numbers<[1], [0], [0], [1], [0, 0, 1, 1], [], []>} : vector<4x500xbf16>, vector<500x8xbf16>, vector<4x8xf32> -> vector<4x8xf32>
    %c0_20 = arith.constant 0 : index
    %c0_21 = arith.constant 0 : index
    %23 = vector.load %arg8[%c0_20, %c0_21] : memref<1x8xf32, #tpu.memory_space<vmem>>, vector<1x8xf32>
    %24 = vector.broadcast %23 : vector<1x8xf32> to vector<4x8xf32>
    %25 = arith.addf %22, %24 : vector<4x8xf32>
    %c0_22 = arith.constant 0 : index
    %c0_23 = arith.constant 0 : index
    %26 = vector.load %arg9[%c0_22, %c0_23] : memref<4x8xf32, #tpu.memory_space<vmem>>, vector<4x8xf32>
    tpu.vector_store %arg9[%c0_22, %c0_23], %25 {strides = array<i32>} : memref<4x8xf32, #tpu.memory_space<vmem>>, vector<4x8xf32>,
    return
  }
}

</mosaic_0001>

<bundles_post_ra>
// kernel: tpu_custom_call.1
= control target key start
LH: loop header
LB: loop body
LE: loop exit
PB: predicated region body
PF: predicated region fallthrough
CT: control target
= control target key end

     0   :  { %14 = vsyncpa [#allocation3], 0  ;;  %s7571_s0 = inlined_call_operand.hbm [shape: bf16[4,32], index: 0, kind: input, shape index: {}]   ;;  %s7572_s1 = inlined_call_operand.hbm [shape: bf16[4,32], index: 1, kind: input, shape index: {}]   ;;  %s7573_s2 = inlined_call_operand.hbm [shape: bf16[32,2000], index: 2, kind: input, shape index: {}]   ;;  %s7574_s3 = inlined_call_operand.hbm [shape: bf16[32,2000], index: 3, kind: input, shape index: {}]   ;;  %s7575_s4 = inlined_call_operand.hbm [shape: f32[1,2000], index: 4, kind: input, shape index: {}]   ;;  %s7576_s5 = inlined_call_operand.hbm [shape: bf16[2000,500], index: 5, kind: input, shape index: {}]   ;;  %s7577_s6 = inlined_call_operand.hbm [shape: f32[1,500], index: 6, kind: input, shape index: {}]   ;;  %s7578_s7 = inlined_call_operand.vmem [shape: bf16[500,8], index: 7, kind: input, shape index: {}]   ;;  %s7579_s8 = inlined_call_operand.hbm [shape: f32[1,8], index: 8, kind: input, shape index: {}]   ;;  %s7580_s9 = inlined_call_operand.hbm [shape: f32[4,8], index: 9, kind: output, shape index: {}]  }
   0x1   :  { %15 = vsyncpa [#allocation6], 0 }
   0x2   :  { %16 = vsyncpa [#allocation9], 0 }
   0x3   :  { %17 = vsyncpa [#allocation12], 0 }
   0x4   :  { %18 = vsyncpa [#allocation15], 0 }
   0x5   :  { %19 = vsyncpa [#allocation4], 0  ;;  %s7100_s30 = smov [#allocation5]   ;;  %s6890_s13 = scalar_lea.hbm %s7572_s1, 32 }
   0x6   :  { %s36_s10 = sshll.u32 %s7100_s30, 4  ;;  %p6891_p0 = scmp.ne.s32.totalorder %s7572_s1, %s6890_s13  ;;  %s37_s10 = int_to_ptr.vmem [resolvable:$true] %s36_s10 }
   0x7   :  { %p6894_p1 = scmp.lt.u32.totalorder %s6890_s13, %s7572_s1 }
   0x9   :  { %p6896_p2 = pnand %p6894_p1, %p6891_p0 }
   0xb   :  { %6899 = shalt.err (!%p6896_p2)
}
   0xc   :  { %s6900_s18 = scalar_lea.vmem %s37_s10, 32  ;;  %p6905_p4 = scmp.lt.s32.totalorder %s37_s10, %s37_s10 }
   0xd   :  { %p6901_p3 = scmp.ne.s32.totalorder %s37_s10, %s6900_s18  ;;  %p6906_p5 = scmp.lt.s32.totalorder %s6900_s18, %s6900_s18 }
   0xf   :  { %p6907_p6 = por %p6906_p5, %p6905_p4 }
  0x11   :  { %p6908_p7 = pnand %p6907_p6, %p6901_p3 }
  0x13   :  { %6911 = shalt.err (!%p6908_p7)
}
  0x14   :  { %39 = dma.hbm_to_vmem [thread:$0]  %s7572_s1, 32, %s37_s10, [#allocation6]  }
  0x15   :  { %s7101_s21 = smov [#allocation8]   ;;  %s7102_s23 = smov [#allocation11]  }
  0x16   :  { %s57_s22 = sshll.u32 %s7101_s21, 4  ;;  %s79_s24 = sshll.u32 %s7102_s23, 4  ;;  %s58_s22 = int_to_ptr.vmem [resolvable:$true] %s57_s22  ;;  %s80_s24 = int_to_ptr.vmem [resolvable:$true] %s79_s24 }
  0x17   :  { %s6912_s27 = scalar_lea.hbm %s7574_s3, 4096 }
  0x18   :  { %p6913_p8 = scmp.ne.s32.totalorder %s7574_s3, %s6912_s27  ;;  %p6916_p9 = scmp.lt.u32.totalorder %s6912_s27, %s7574_s3 }
  0x1a   :  { %p6918_p10 = pnand %p6916_p9, %p6913_p8 }
  0x1c   :  { %6921 = shalt.err (!%p6918_p10)
}
  0x1d   :  { %s6922_s1 = scalar_lea.vmem %s58_s22, 4096  ;;  %p6927_p12 = scmp.lt.s32.totalorder %s58_s22, %s58_s22 }
  0x1e   :  { %p6923_p11 = scmp.ne.s32.totalorder %s58_s22, %s6922_s1  ;;  %p6928_p13 = scmp.lt.s32.totalorder %s6922_s1, %s6922_s1 }
  0x20   :  { %p6929_p0 = por %p6928_p13, %p6927_p12 }
  0x22   :  { %p6930_p1 = pnand %p6929_p0, %p6923_p11 }
  0x24   :  { %6933 = shalt.err (!%p6930_p1)
}
  0x25   :  { %s7103_s10 = smov 1024   ;;  %s7104_s12 = smov 64  }
  0x26   :  { %63 = dma.hbm_to_vmem [thread:$0]  %s7574_s3, 4096, %s58_s22, [#allocation9], %s7103_s10, %s7103_s10, %s7104_s12  }
  0x27   :  { %s6934_s17 = scalar_lea.hbm %s7576_s5, 64000 }
  0x28   :  { %p6935_p2 = scmp.ne.s32.totalorder %s7576_s5, %s6934_s17  ;;  %p6938_p3 = scmp.lt.u32.totalorder %s6934_s17, %s7576_s5 }
  0x2a   :  { %p6940_p4 = pnand %p6938_p3, %p6935_p2 }
  0x2c   :  { %6943 = shalt.err (!%p6940_p4)
}
  0x2d   :  { %s6944_s23 = scalar_lea.vmem %s80_s24, 64000  ;;  %p6949_p6 = scmp.lt.s32.totalorder %s80_s24, %s80_s24 }
  0x2e   :  { %p6945_p5 = scmp.ne.s32.totalorder %s80_s24, %s6944_s23  ;;  %p6950_p7 = scmp.lt.s32.totalorder %s6944_s23, %s6944_s23 }
  0x30   :  { %p6951_p8 = por %p6950_p7, %p6949_p6 }
  0x32   :  { %p6952_p9 = pnand %p6951_p8, %p6945_p5 }
  0x34   :  { %6955 = shalt.err (!%p6952_p9)
}
  0x35   :  { %s7105_s3 = smov 256   ;;  %s7106_s22 = smov 16  }
  0x36   :  { %85 = dma.hbm_to_vmem [thread:$0]  %s7576_s5, 64000, %s80_s24, [#allocation12], %s7105_s3, %s7105_s3, %s7106_s22  }
  0x37   :  { %s7107_s27 = smov [#allocation2]   ;;  %s7108_s29 = smov [#allocation7]  }
  0x38   :  { %s26_s28 = sshll.u32 %s7107_s27, 4  ;;  %s45_s30 = sshll.u32 %s7108_s29, 4  ;;  %s27_s28 = int_to_ptr.vmem [resolvable:$true] %s26_s28  ;;  %s46_s30 = int_to_ptr.vmem [resolvable:$true] %s45_s30 }
  0x39   :  { %s6956_s13 = scalar_lea.hbm %s7571_s0, 32 }
  0x3a   :  { %p6957_p10 = scmp.ne.s32.totalorder %s7571_s0, %s6956_s13  ;;  %p6960_p11 = scmp.lt.u32.totalorder %s6956_s13, %s7571_s0 }
  0x3c   :  { %p6962_p12 = pnand %p6960_p11, %p6957_p10 }
  0x3e   :  { %6965 = shalt.err (!%p6962_p12)
}
  0x3f   :  { %s6966_s5 = scalar_lea.vmem %s27_s28, 32  ;;  %p6971_p0 = scmp.lt.s32.totalorder %s27_s28, %s27_s28 }
  0x40   :  { %p6967_p13 = scmp.ne.s32.totalorder %s27_s28, %s6966_s5  ;;  %p6972_p1 = scmp.lt.s32.totalorder %s6966_s5, %s6966_s5 }
  0x42   :  { %p6973_p2 = por %p6972_p1, %p6971_p0 }
  0x44   :  { %p6974_p3 = pnand %p6973_p2, %p6967_p13 }
  0x46   :  { %6977 = shalt.err (!%p6974_p3)
}
  0x47   :  { %29 = dma.hbm_to_vmem [thread:$0]  %s7571_s0, 32, %s27_s28, [#allocation3]  }
  0x48   :  { %s6978_s21 = scalar_lea.hbm %s7573_s2, 4096 }
  0x49   :  { %p6979_p4 = scmp.ne.s32.totalorder %s7573_s2, %s6978_s21  ;;  %p6982_p5 = scmp.lt.u32.totalorder %s6978_s21, %s7573_s2 }
  0x4b   :  { %p6984_p6 = pnand %p6982_p5, %p6979_p4 }
  0x4d   :  { %6987 = shalt.err (!%p6984_p6)
}
  0x4e   :  { %s6988_s26 = scalar_lea.vmem %s46_s30, 4096  ;;  %p6993_p8 = scmp.lt.s32.totalorder %s46_s30, %s46_s30 }
  0x4f   :  { %p6989_p7 = scmp.ne.s32.totalorder %s46_s30, %s6988_s26  ;;  %p6994_p9 = scmp.lt.s32.totalorder %s6988_s26, %s6988_s26 }
  0x51   :  { %p6995_p10 = por %p6994_p9, %p6993_p8 }
  0x53   :  { %p6996_p11 = pnand %p6995_p10, %p6989_p7 }
  0x55   :  { %6999 = shalt.err (!%p6996_p11)
}
  0x56   :  { %51 = dma.hbm_to_vmem [thread:$0]  %s7573_s2, 4096, %s46_s30, [#allocation6], %s7103_s10, %s7103_s10, %s7104_s12  }
  0x57   :  { %s7109_s28 = smov [#allocation10]   ;;  %s7110_s11 = smov [#allocation13]  }
  0x58   :  { %s70_s29 = sshll.u32 %s7109_s28, 4  ;;  %s92_s1 = sshll.u32 %s7110_s11, 4  ;;  %s71_s29 = int_to_ptr.vmem [resolvable:$true] %s70_s29  ;;  %s93_s1 = int_to_ptr.vmem [resolvable:$true] %s92_s1 }
  0x59   :  { %s7000_s15 = scalar_lea.hbm %s7575_s4, 256 }
  0x5a   :  { %p7001_p12 = scmp.ne.s32.totalorder %s7575_s4, %s7000_s15  ;;  %p7004_p13 = scmp.lt.u32.totalorder %s7000_s15, %s7575_s4 }
  0x5c   :  { %p7006_p0 = pnand %p7004_p13, %p7001_p12 }
  0x5e   :  { %7009 = shalt.err (!%p7006_p0)
}
  0x5f   :  { %s7010_s2 = scalar_lea.vmem %s71_s29, 256  ;;  %p7015_p2 = scmp.lt.s32.totalorder %s71_s29, %s71_s29 }
  0x60   :  { %p7011_p1 = scmp.ne.s32.totalorder %s71_s29, %s7010_s2  ;;  %p7016_p3 = scmp.lt.s32.totalorder %s7010_s2, %s7010_s2 }
  0x62   :  { %p7017_p4 = por %p7016_p3, %p7015_p2 }
  0x64   :  { %p7018_p5 = pnand %p7017_p4, %p7011_p1 }
  0x66   :  { %7021 = shalt.err (!%p7018_p5)
}
  0x67   :  { %73 = dma.hbm_to_vmem [thread:$0]  %s7575_s4, 256, %s71_s29, [#allocation9]  }
  0x68   :  { %s7022_s19 = scalar_lea.hbm %s7577_s6, 64 }
  0x69   :  { %p7023_p6 = scmp.ne.s32.totalorder %s7577_s6, %s7022_s19  ;;  %p7026_p7 = scmp.lt.u32.totalorder %s7022_s19, %s7577_s6 }
  0x6b   :  { %p7028_p8 = pnand %p7026_p7, %p7023_p6 }
  0x6d   :  { %7031 = shalt.err (!%p7028_p8)
}
  0x6e   :  { %s7032_s22 = scalar_lea.vmem %s93_s1, 64  ;;  %p7037_p10 = scmp.lt.s32.totalorder %s93_s1, %s93_s1 }
  0x6f   :  { %p7033_p9 = scmp.ne.s32.totalorder %s93_s1, %s7032_s22  ;;  %p7038_p11 = scmp.lt.s32.totalorder %s7032_s22, %s7032_s22 }
  0x71   :  { %p7039_p12 = por %p7038_p11, %p7037_p10 }
  0x73   :  { %p7040_p13 = pnand %p7039_p12, %p7033_p9 }
  0x75   :  { %7043 = shalt.err (!%p7040_p13)
}
  0x76   :  { %95 = dma.hbm_to_vmem [thread:$0]  %s7577_s6, 64, %s93_s1, [#allocation12]  }
  0x77   :  { %s7111_s26 = smov [#allocation14]   ;;  %s7044_s29 = scalar_lea.hbm %s7579_s8, 16 }
  0x78   :  { %s104_s0 = sshll.u32 %s7111_s26, 4  ;;  %p7045_p0 = scmp.ne.s32.totalorder %s7579_s8, %s7044_s29  ;;  %s105_s0 = int_to_ptr.vmem [resolvable:$true] %s104_s0 }
  0x79   :  { %p7048_p1 = scmp.lt.u32.totalorder %s7044_s29, %s7579_s8 }
  0x7b   :  { %p7050_p2 = pnand %p7048_p1, %p7045_p0 }
  0x7d   :  { %7053 = shalt.err (!%p7050_p2)
}
  0x7e   :  { %s7054_s16 = scalar_lea.vmem %s105_s0, 16  ;;  %s7058_s6 = scalar_lea.vmem %s105_s0, 32 }
  0x7f   :  { %p7055_p3 = scmp.ne.s32.totalorder %s105_s0, %s7054_s16  ;;  %p7059_p4 = scmp.lt.s32.totalorder %s105_s0, %s105_s0 }
  0x80   :  { %p7060_p5 = scmp.lt.s32.totalorder %s7058_s6, %s7054_s16 }
  0x82   :  { %p7061_p6 = por %p7060_p5, %p7059_p4 }
  0x84   :  { %p7062_p7 = pnand %p7061_p6, %p7055_p3 }
  0x86   :  { %7065 = shalt.err (!%p7062_p7)
}
  0x87   :  { %107 = dma.hbm_to_vmem [thread:$0]  %s7579_s8, 16, %s105_s0, [#allocation15]  }
  0x88   :  { %7088 = dma.done.wait [#allocation3], 32  }
  0x89   :  { %7089 = vsyncadd [#allocation3], 4294967264 }
  0x8a   :  { %7090 = dma.done.wait [#allocation6], 4128  }
  0x8b   :  { %7091 = vsyncadd [#allocation6], 4294963168 }
  0x8c   :  { %7092 = dma.done.wait [#allocation9], 4352  }
  0x8d   :  { %7093 = vsyncadd [#allocation9], 4294962944 }
  0x8e   :  { %7094 = dma.done.wait [#allocation12], 64064  }
  0x8f   :  { %7095 = vsyncadd [#allocation12], 4294903232 }
  0x90   :  { %7096 = dma.done.wait [#allocation15], 16  }
  0x91   :  { %7097 = vsyncadd [#allocation15], 4294967280  ;;  %v7112_v0 = vmov 0   ;;  %v167_v1 = vld [vmem:[#allocation8] sm:$0xff]  ;;  %v169_v8 = vld [vmem:[#allocation8 + $0x10] sm:$0xff]  ;;  %vm359_vm0 = vcmask 261120  }
  0x92   :  { %395 = vmatprep.mubr.bf16.mxu0 %v7112_v0  ;;  %436 = vmatprep.mubr.bf16.mxu1 %v7112_v0  ;;  %v175_v2 = vld [vmem:[#allocation8 + $0x40] sm:$0xff]  ;;  %v177_v9 = vld [vmem:[#allocation8 + $0x50] sm:$0xff]  ;;  %v168_v12 = vld [vmem:[#allocation8 + $0x8] sm:$0xff]  ;;  %vm4336_vm1 = vcmask 654336   ;;  %vm5267_vm2 = vcmask 1041408   ;;  %vm5263_vm3 = vcmask 949248  }
  0x93   :  { %v183_v3 = vld [vmem:[#allocation8 + $0x80] sm:$0xff]  ;;  %v5373_v4 = vcombine.high %v167_v1, %v175_v2  ;;  %v5372_v5 = vcombine.low %v167_v1, %v175_v2  ;;  %v5377_v11 = vcombine.high %v169_v8, %v177_v9  ;;  %v185_v13 = vld [vmem:[#allocation8 + $0x90] sm:$0xff]  ;;  %v176_v15 = vld [vmem:[#allocation8 + $0x48] sm:$0xff]  ;;  %v5376_v21 = vcombine.low %v169_v8, %v177_v9 }
  0x94   :  { %v191_v6 = vld [vmem:[#allocation8 + $0xc0] sm:$0xff]  ;;  %v193_v14 = vld [vmem:[#allocation8 + $0xd0] sm:$0xff]  ;;  %v5375_v16 = vcombine.high %v168_v12, %v176_v15  ;;  %v5374_v17 = vcombine.low %v168_v12, %v176_v15  ;;  %v184_v18 = vld [vmem:[#allocation8 + $0x88] sm:$0xff]  ;;  %vm5351_vm4 = vcmask 60416  }
  0x95   :  { %v5389_v7 = vcombine.high %v183_v3, %v191_v6  ;;  %363 = vmatprep.subr.bf16.mxu0 %v5373_v4  ;;  %v5388_v10 = vcombine.low %v183_v3, %v191_v6  ;;  %v192_v19 = vld [vmem:[#allocation8 + $0xc8] sm:$0xff]  ;;  %v7268_v20 = vld [vmem:[#allocation5] sm:$0x3]  ;;  %v5393_v25 = vcombine.high %v185_v13, %v193_v14  ;;  %v171_v26 = vld [vmem:[#allocation8 + $0x20] sm:$0xff]  ;;  %v5392_v30 = vcombine.low %v185_v13, %v193_v14 }
  0x96   :  { %364 = vmatpush1.bf16.msra.mxu0 %v5372_v5  ;;  %v5391_v22 = vcombine.high %v184_v18, %v192_v19  ;;  %v170_v23 = vld [vmem:[#allocation8 + $0x18] sm:$0xff]  ;;  %404 = vmatprep.subr.bf16.mxu1 %v5375_v16  ;;  %v179_v27 = vld [vmem:[#allocation8 + $0x60] sm:$0xff]  ;;  %v5390_v28 = vcombine.low %v184_v18, %v192_v19  ;;  %v172_v39 = vld [vmem:[#allocation8 + $0x28] sm:$0xff] }
  0x97   :  { %365 = vmatprep.subr.bf16.mxu0 %v5389_v7  ;;  %v178_v24 = vld [vmem:[#allocation8 + $0x58] sm:$0xff]  ;;  %405 = vmatpush1.bf16.msra.mxu1 %v5374_v17  ;;  %v5381_v33 = vcombine.high %v171_v26, %v179_v27  ;;  %v187_v34 = vld [vmem:[#allocation8 + $0xa0] sm:$0xff]  ;;  %v5380_v38 = vcombine.low %v171_v26, %v179_v27  ;;  %v180_v40 = vld [vmem:[#allocation8 + $0x68] sm:$0xff] }
  0x98   :  { %406 = vmatprep.subr.bf16.mxu1 %v5391_v22  ;;  %v5379_v29 = vcombine.high %v170_v23, %v178_v24  ;;  %v186_v31 = vld [vmem:[#allocation8 + $0x98] sm:$0xff]  ;;  %v195_v35 = vld [vmem:[#allocation8 + $0xe0] sm:$0xff]  ;;  %v5378_v36 = vcombine.low %v170_v23, %v178_v24  ;;  %v173_v42 = vld [vmem:[#allocation8 + $0x30] sm:$0xff]  ;;  %v5383_v45 = vcombine.high %v172_v39, %v180_v40  ;;  %v5382_v52 = vcombine.low %v172_v39, %v180_v40 }
  0x99   :  { %v194_v32 = vld [vmem:[#allocation8 + $0xd8] sm:$0xff]  ;;  %v5397_v41 = vcombine.high %v187_v34, %v195_v35  ;;  %v181_v43 = vld [vmem:[#allocation8 + $0x70] sm:$0xff]  ;;  %v5396_v46 = vcombine.low %v187_v34, %v195_v35  ;;  %v188_v47 = vld [vmem:[#allocation8 + $0xa8] sm:$0xff] }
  0x9a   :  { %366 = vmatpush1.bf16.msra.mxu0 %v5388_v10  ;;  %v5395_v37 = vcombine.high %v186_v31, %v194_v32  ;;  %v5394_v44 = vcombine.low %v186_v31, %v194_v32  ;;  %v196_v48 = vld [vmem:[#allocation8 + $0xe8] sm:$0xff]  ;;  %v5385_v49 = vcombine.high %v173_v42, %v181_v43  ;;  %v189_v50 = vld [vmem:[#allocation8 + $0xb0] sm:$0xff]  ;;  %v5384_v54 = vcombine.low %v173_v42, %v181_v43  ;;  %v174_v55 = vld [vmem:[#allocation8 + $0x38] sm:$0xff] }
  0x9b   :  { %445 = vmatprep.subr.bf16.mxu0 %v5377_v11  ;;  %407 = vmatpush1.bf16.msra.mxu1 %v5390_v28  ;;  %v197_v51 = vld [vmem:[#allocation8 + $0xf0] sm:$0xff]  ;;  %v5399_v53 = vcombine.high %v188_v47, %v196_v48  ;;  %v182_v56 = vld [vmem:[#allocation8 + $0x78] sm:$0xff]  ;;  %v134_v58 = vld [vmem:[#allocation7] sm:$0xff]  ;;  %v5398_v60 = vcombine.low %v188_v47, %v196_v48 }
  0x9c   :  { %486 = vmatprep.subr.bf16.mxu1 %v5379_v29  ;;  %v5401_v57 = vcombine.high %v189_v50, %v197_v51  ;;  %v142_v59 = vld [vmem:[#allocation7 + $0x40] sm:$0xff]  ;;  %v5387_v61 = vcombine.high %v174_v55, %v182_v56  ;;  %v5400_v62 = vcombine.low %v189_v50, %v197_v51  ;;  %v190_v63 = vld [vmem:[#allocation8 + $0xb8] sm:$0xff]  ;;  %v5386_v5 = vcombine.low %v174_v55, %v182_v56  ;;  %v135_v8 = vld [vmem:[#allocation7 + $0x8] sm:$0xff] }
  0x9d   :  { %5404 = vmatmul.mubr.msk.bf16.vlgmr.msra.gmra.mrb[0].mxu0 %vm359_vm0, %v7268_v20  ;;  %v198_v1 = vld [vmem:[#allocation8 + $0xf8] sm:$0xff]  ;;  %v5413_v2 = vcombine.high %v134_v58, %v142_v59  ;;  %v150_v3 = vld [vmem:[#allocation7 + $0x80] sm:$0xff]  ;;  %v5412_v7 = vcombine.low %v134_v58, %v142_v59  ;;  %v143_v9 = vld [vmem:[#allocation7 + $0x48] sm:$0xff] }
  0x9e   :  { %446 = vmatpush1.bf16.msra.mxu0 %v5376_v21  ;;  %477 = vmatprep.mubr.bf16.mxu0 %v7112_v0  ;;  %v158_v4 = vld [vmem:[#allocation7 + $0xc0] sm:$0xff]  ;;  %v5403_v6 = vcombine.high %v190_v63, %v198_v1  ;;  %v136_v11 = vld [vmem:[#allocation7 + $0x10] sm:$0xff]  ;;  %v5402_v13 = vcombine.low %v190_v63, %v198_v1  ;;  %v5415_v14 = vcombine.high %v135_v8, %v143_v9  ;;  %v151_v16 = vld [vmem:[#allocation7 + $0x88] sm:$0xff] }
  0x9f   :  { %447 = vmatprep.subr.bf16.mxu0 %v5393_v25  ;;  %5405 = vmatmul.mubr.msk.bf16.vlgmr.msra.gmra.mrb[0].mxu1 %vm359_vm0, %v7268_v20  ;;  %v5429_v10 = vcombine.high %v150_v3, %v158_v4  ;;  %v144_v12 = vld [vmem:[#allocation7 + $0x50] sm:$0xff]  ;;  %v5428_v15 = vcombine.low %v150_v3, %v158_v4  ;;  %v159_v17 = vld [vmem:[#allocation7 + $0xc8] sm:$0xff]  ;;  %v7291_v22 = vld [vmem:[#allocation2] sm:$0x3]  ;;  %v5414_v23 = vcombine.low %v135_v8, %v143_v9 }
  0xa0   :  { %487 = vmatpush1.bf16.msra.mxu1 %v5378_v36  ;;  %518 = vmatprep.mubr.bf16.mxu1 %v7112_v0  ;;  %v5417_v18 = vcombine.high %v136_v11, %v144_v12  ;;  %v152_v19 = vld [vmem:[#allocation7 + $0x90] sm:$0xff]  ;;  %v137_v24 = vld [vmem:[#allocation7 + $0x18] sm:$0xff]  ;;  %v5431_v26 = vcombine.high %v151_v16, %v159_v17  ;;  %v5416_v27 = vcombine.low %v136_v11, %v144_v12  ;;  %v138_v28 = vld [vmem:[#allocation7 + $0x20] sm:$0xff] }
  0xa1   :  { %488 = vmatprep.subr.bf16.mxu1 %v5395_v37  ;;  %v160_v21 = vld [vmem:[#allocation7 + $0xd0] sm:$0xff]  ;;  %v145_v25 = vld [vmem:[#allocation7 + $0x58] sm:$0xff]  ;;  %v146_v29 = vld [vmem:[#allocation7 + $0x60] sm:$0xff]  ;;  %v5430_v31 = vcombine.low %v151_v16, %v159_v17 }
  0xa2   :  { %448 = vmatpush1.bf16.msra.mxu0 %v5392_v30  ;;  %v5433_v30 = vcombine.high %v152_v19, %v160_v21  ;;  %v153_v32 = vld [vmem:[#allocation7 + $0x98] sm:$0xff]  ;;  %v5419_v34 = vcombine.high %v137_v24, %v145_v25  ;;  %v5432_v35 = vcombine.low %v152_v19, %v160_v21  ;;  %v154_v36 = vld [vmem:[#allocation7 + $0xa0] sm:$0xff]  ;;  %v139_v39 = vld [vmem:[#allocation7 + $0x28] sm:$0xff]  ;;  %v5420_v42 = vcombine.low %v138_v28, %v146_v29 }
  0xa3   :  { %527 = vmatprep.subr.bf16.mxu0 %v5381_v33  ;;  %v161_v33 = vld [vmem:[#allocation7 + $0xd8] sm:$0xff]  ;;  %v162_v37 = vld [vmem:[#allocation7 + $0xe0] sm:$0xff]  ;;  %v147_v40 = vld [vmem:[#allocation7 + $0x68] sm:$0xff] }
  0xa4   :  { %489 = vmatpush1.bf16.msra.mxu1 %v5394_v44  ;;  %v140_v43 = vld [vmem:[#allocation7 + $0x30] sm:$0xff]  ;;  %v155_v47 = vld [vmem:[#allocation7 + $0xa8] sm:$0xff]  ;;  %v5436_v50 = vcombine.low %v154_v36, %v162_v37  ;;  %v141_v55 = vld [vmem:[#allocation7 + $0x38] sm:$0xff] }
  0xa5   :  { %5406 = vmatmul.mubr.msk.bf16.vlgmr.msra.gmra.mrb[4].mxu0 %vm359_vm0, %v7268_v20  ;;  %568 = vmatprep.subr.bf16.mxu1 %v5383_v45  ;;  %v148_v44 = vld [vmem:[#allocation7 + $0x70] sm:$0xff]  ;;  %v5437_v45 = vcombine.high %v154_v36, %v162_v37  ;;  %v163_v48 = vld [vmem:[#allocation7 + $0xe8] sm:$0xff]  ;;  %v149_v56 = vld [vmem:[#allocation7 + $0x78] sm:$0xff] }
  0xa6   :  { %528 = vmatpush1.bf16.msra.mxu0 %v5380_v38  ;;  %559 = vmatprep.mubr.bf16.mxu0 %v7112_v0  ;;  %v5421_v38 = vcombine.high %v138_v28, %v146_v29  ;;  %v156_v51 = vld [vmem:[#allocation7 + $0xb0] sm:$0xff]  ;;  %v5424_v58 = vcombine.low %v140_v43, %v148_v44  ;;  %v5427_v63 = vcombine.high %v141_v55, %v149_v56  ;;  %v6110_v11 = vld [vmem:[#allocation11 + $0x8] ss:$16 sps:$4 sm:$0xff]   ;;  %v6118_v12 = vld [vmem:[#allocation11 + $0x2c] ss:$16 sps:$4 sm:$0xff]  }
  0xa7   :  { %529 = vmatprep.subr.bf16.mxu0 %v5397_v41  ;;  %5407 = vmatmul.mubr.msk.bf16.vlgmr.msra.gmra.mrb[4].mxu1 %vm359_vm0, %v7268_v20  ;;  %v5435_v41 = vcombine.high %v153_v32, %v161_v33  ;;  %v6109_v1 = vld [vmem:[#allocation11 + $0x4] ss:$16 sps:$4 sm:$0xff]   ;;  %v5426_v3 = vcombine.low %v141_v55, %v149_v56  ;;  %v6107_v4 = vld [vmem:[#allocation11] ss:$16 sps:$4 sm:$0xff]   ;;  %v6130_v19 = vld [vmem:[#allocation11 + $0x6c] ss:$16 sps:$4 sm:$0xff]  }
  0xa8   :  { %569 = vmatpush1.bf16.msra.mxu1 %v5382_v52  ;;  %600 = vmatprep.mubr.bf16.mxu1 %v7112_v0  ;;  %v164_v52 = vld [vmem:[#allocation7 + $0xf0] sm:$0xff]  ;;  %v6140_v28 = vld [vmem:[#allocation11 + $0xa8] ss:$16 sps:$4 sm:$0xff]   ;;  %v6154_v36 = vld [vmem:[#allocation11 + $0xec] ss:$16 sps:$4 sm:$0xff]  }
  0xa9   :  { %570 = vmatprep.subr.bf16.mxu1 %v5399_v53  ;;  %v5425_v53 = vcombine.high %v140_v43, %v148_v44  ;;  %v5441_v59 = vcombine.high %v156_v51, %v164_v52  ;;  %v6113_v9 = vld [vmem:[#allocation11 + $0x20] ss:$16 sps:$4 sm:$0xff]   ;;  %v6133_v17 = vld [vmem:[#allocation11 + $0x84] ss:$16 sps:$4 sm:$0xff]   ;;  %v6166_v43 = vld [vmem:[#allocation11 + $0x12c] ss:$16 sps:$4 sm:$0xff]  }
  0xaa   :  { %530 = vmatpush1.bf16.msra.mxu0 %v5396_v46  ;;  %v5434_v46 = vcombine.low %v153_v32, %v161_v33  ;;  %v6125_v16 = vld [vmem:[#allocation11 + $0x60] ss:$16 sps:$4 sm:$0xff]   ;;  %v6145_v29 = vld [vmem:[#allocation11 + $0xc4] ss:$16 sps:$4 sm:$0xff]   ;;  %v6146_v32 = vld [vmem:[#allocation11 + $0xc8] ss:$16 sps:$4 sm:$0xff]  }
  0xab   :  { %609 = vmatprep.subr.bf16.mxu0 %v5385_v49  ;;  %v5423_v49 = vcombine.high %v139_v39, %v147_v40  ;;  %v6131_v21 = vld [vmem:[#allocation11 + $0x80] ss:$16 sps:$4 sm:$0xff]   ;;  %v6157_v37 = vld [vmem:[#allocation11 + $0x104] ss:$16 sps:$4 sm:$0xff]   ;;  %v6182_v55 = vld [vmem:[#allocation11 + $0x188] ss:$16 sps:$4 sm:$0xff]  }
  0xac   :  { %571 = vmatpush1.bf16.msra.mxu1 %v5398_v60  ;;  %v5438_v60 = vcombine.low %v155_v47, %v163_v48  ;;  %v6149_v33 = vld [vmem:[#allocation11 + $0xe0] ss:$16 sps:$4 sm:$0xff]   ;;  %v6169_v44 = vld [vmem:[#allocation11 + $0x144] ss:$16 sps:$4 sm:$0xff]  }
  0xad   :  { %5408 = vmatmul.mubr.msk.bf16.vlgmr.msra.gmra.mrb[8].mxu0 %vm359_vm0, %v7268_v20  ;;  %650 = vmatprep.subr.bf16.mxu1 %v5387_v61  ;;  %v157_v61 = vld [vmem:[#allocation7 + $0xb8] sm:$0xff]  ;;  %v6185_v56 = vld [vmem:[#allocation11 + $0x1a0] ss:$16 sps:$4 sm:$0xff]  }
  0xae   :  { %610 = vmatpush1.bf16.msra.mxu0 %v5384_v54  ;;  %641 = vmatprep.mubr.bf16.mxu0 %v7112_v0  ;;  %v5422_v54 = vcombine.low %v139_v39, %v147_v40  ;;  %v6158_v39 = vld [vmem:[#allocation11 + $0x108] ss:$16 sps:$4 sm:$0xff]   ;;  %v6161_v40 = vld [vmem:[#allocation11 + $0x120] ss:$16 sps:$4 sm:$0xff]  }
  0xaf   :  { %611 = vmatprep.subr.bf16.mxu0 %v5401_v57  ;;  %5409 = vmatmul.mubr.msk.bf16.vlgmr.msra.gmra.mrb[8].mxu1 %vm359_vm0, %v7268_v20  ;;  %v5439_v57 = vcombine.high %v155_v47, %v163_v48  ;;  %v6170_v47 = vld [vmem:[#allocation11 + $0x148] ss:$16 sps:$4 sm:$0xff]   ;;  %v6173_v48 = vld [vmem:[#allocation11 + $0x160] ss:$16 sps:$4 sm:$0xff]  }
  0xb0   :  { %651 = vmatpush1.bf16.msra.mxu1 %v5386_v5  ;;  %682 = vmatprep.mubr.bf16.mxu1 %v7112_v0 }
  0xb1   :  { %652 = vmatprep.subr.bf16.mxu1 %v5403_v6  ;;  %v6115_v6 = vld [vmem:[#allocation11 + $0x24] ss:$16 sps:$4 sm:$0xff]  }
  0xb2   :  { %612 = vmatpush1.bf16.msra.mxu0 %v5400_v62  ;;  %v165_v62 = vld [vmem:[#allocation7 + $0xf8] sm:$0xff] }
  0xb3   :  { %854 = vmatprep.subr.bf16.mxu0 %v5413_v2  ;;  %v5440_v2 = vcombine.low %v156_v51, %v164_v52  ;;  %v5443_v5 = vcombine.high %v157_v61, %v165_v62  ;;  %v5442_v8 = vcombine.low %v157_v61, %v165_v62  ;;  %v6178_v51 = vld [vmem:[#allocation11 + $0x16c] ss:$16 sps:$4 sm:$0xff]   ;;  %v6181_v52 = vld [vmem:[#allocation11 + $0x184] ss:$16 sps:$4 sm:$0xff]   ;;  %v1186_v62 = vlaneseq }
  0xb4   :  { %653 = vmatpush1.bf16.msra.mxu1 %v5402_v13  ;;  %v6119_v13 = vld [vmem:[#allocation11 + $0x40] ss:$16 sps:$4 sm:$0xff]   ;;  %v6196_v61 = vld [vmem:[#allocation11 + $0x1cc] ss:$16 sps:$4 sm:$0xff]  }
  0xb5   :  { %5410 = vmatmul.mubr.msk.bf16.vlgmr.msra.gmra.mrb[12].mxu0 %vm359_vm0, %v7268_v20  ;;  %895 = vmatprep.subr.bf16.mxu1 %v5415_v14  ;;  %v6127_v14 = vld [vmem:[#allocation11 + $0x64] ss:$16 sps:$4 sm:$0xff]  }
  0xb6   :  { %855 = vmatpush1.bf16.msra.mxu0 %v5412_v7  ;;  %886 = vmatprep.mubr.bf16.mxu0 %v7112_v0  ;;  %v6112_v7 = vld [vmem:[#allocation11 + $0xc] ss:$16 sps:$4 sm:$0xff]  }
  0xb7   :  { %856 = vmatprep.subr.bf16.mxu0 %v5429_v10  ;;  %5411 = vmatmul.mubr.msk.bf16.vlgmr.msra.gmra.mrb[12].mxu1 %vm359_vm0, %v7268_v20  ;;  %v5418_v20 = vcombine.low %v137_v24, %v145_v25  ;;  %v6121_v10 = vld [vmem:[#allocation11 + $0x44] ss:$16 sps:$4 sm:$0xff]   ;;  %v6128_v24 = vld [vmem:[#allocation11 + $0x68] ss:$16 sps:$4 sm:$0xff]   ;;  %v6136_v25 = vld [vmem:[#allocation11 + $0x8c] ss:$16 sps:$4 sm:$0xff]  }
  0xb8   :  { %896 = vmatpush1.bf16.msra.mxu1 %v5414_v23  ;;  %927 = vmatprep.mubr.bf16.mxu1 %v7112_v0  ;;  %v6139_v23 = vld [vmem:[#allocation11 + $0xa4] ss:$16 sps:$4 sm:$0xff]  }
  0xb9   :  { %897 = vmatprep.subr.bf16.mxu1 %v5431_v26  ;;  %v6134_v26 = vld [vmem:[#allocation11 + $0x88] ss:$16 sps:$4 sm:$0xff]  }
  0xba   :  { %857 = vmatpush1.bf16.msra.mxu0 %v5428_v15  ;;  %v6116_v15 = vld [vmem:[#allocation11 + $0x28] ss:$16 sps:$4 sm:$0xff]  }
  0xbb   :  { %936 = vmatprep.subr.bf16.mxu0 %v5417_v18  ;;  %v6122_v18 = vld [vmem:[#allocation11 + $0x48] ss:$16 sps:$4 sm:$0xff]  }
  0xbc   :  { %898 = vmatpush1.bf16.msra.mxu1 %v5430_v31  ;;  %v6143_v31 = vld [vmem:[#allocation11 + $0xc0] ss:$16 sps:$4 sm:$0xff]  }
  0xbd   :  { %5444 = vmatmul.mubr.msk.bf16.vlgmr.msra.gmra.mrb[16].mxu0 %vm359_vm0, %v7291_v22  ;;  %977 = vmatprep.subr.bf16.mxu1 %v5419_v34  ;;  %v6151_v34 = vld [vmem:[#allocation11 + $0xe4] ss:$16 sps:$4 sm:$0xff]  }
  0xbe   :  { %937 = vmatpush1.bf16.msra.mxu0 %v5416_v27  ;;  %968 = vmatprep.mubr.bf16.mxu0 %v7112_v0  ;;  %v6142_v27 = vld [vmem:[#allocation11 + $0xac] ss:$16 sps:$4 sm:$0xff]  }
  0xbf   :  { %938 = vmatprep.subr.bf16.mxu0 %v5433_v30  ;;  %5445 = vmatmul.mubr.msk.bf16.vlgmr.msra.gmra.mrb[16].mxu1 %vm359_vm0, %v7291_v22  ;;  %v6148_v30 = vld [vmem:[#allocation11 + $0xcc] ss:$16 sps:$4 sm:$0xff]  }
  0xc0   :  { %978 = vmatpush1.bf16.msra.mxu1 %v5418_v20  ;;  %1009 = vmatprep.mubr.bf16.mxu1 %v7112_v0  ;;  %v6155_v20 = vld [vmem:[#allocation11 + $0x100] ss:$16 sps:$4 sm:$0xff]  }
  0xc1   :  { %979 = vmatprep.subr.bf16.mxu1 %v5435_v41  ;;  %v6163_v41 = vld [vmem:[#allocation11 + $0x124] ss:$16 sps:$4 sm:$0xff]  }
  0xc2   :  { %939 = vmatpush1.bf16.msra.mxu0 %v5432_v35  ;;  %v6152_v35 = vld [vmem:[#allocation11 + $0xe8] ss:$16 sps:$4 sm:$0xff]  }
  0xc3   :  { %1018 = vmatprep.subr.bf16.mxu0 %v5421_v38  ;;  %v6160_v38 = vld [vmem:[#allocation11 + $0x10c] ss:$16 sps:$4 sm:$0xff]  }
  0xc4   :  { %980 = vmatpush1.bf16.msra.mxu1 %v5434_v46  ;;  %v6167_v46 = vld [vmem:[#allocation11 + $0x140] ss:$16 sps:$4 sm:$0xff]  }
  0xc5   :  { %5446 = vmatmul.mubr.msk.bf16.vlgmr.msra.gmra.mrb[20].mxu0 %vm359_vm0, %v7291_v22  ;;  %1059 = vmatprep.subr.bf16.mxu1 %v5423_v49  ;;  %v6175_v49 = vld [vmem:[#allocation11 + $0x164] ss:$16 sps:$4 sm:$0xff]  }
  0xc6   :  { %1019 = vmatpush1.bf16.msra.mxu0 %v5420_v42  ;;  %1050 = vmatprep.mubr.bf16.mxu0 %v7112_v0  ;;  %v6164_v42 = vld [vmem:[#allocation11 + $0x128] ss:$16 sps:$4 sm:$0xff]  }
  0xc7   :  { %1020 = vmatprep.subr.bf16.mxu0 %v5437_v45  ;;  %5447 = vmatmul.mubr.msk.bf16.vlgmr.msra.gmra.mrb[20].mxu1 %vm359_vm0, %v7291_v22  ;;  %v6172_v45 = vld [vmem:[#allocation11 + $0x14c] ss:$16 sps:$4 sm:$0xff]  }
  0xc8   :  { %1060 = vmatpush1.bf16.msra.mxu1 %v5422_v54  ;;  %1091 = vmatprep.mubr.bf16.mxu1 %v7112_v0  ;;  %v6179_v54 = vld [vmem:[#allocation11 + $0x180] ss:$16 sps:$4 sm:$0xff]  }
  0xc9   :  { %1061 = vmatprep.subr.bf16.mxu1 %v5439_v57  ;;  %v6187_v57 = vld [vmem:[#allocation11 + $0x1a4] ss:$16 sps:$4 sm:$0xff]  }
  0xca   :  { %1021 = vmatpush1.bf16.msra.mxu0 %v5436_v50  ;;  %v6176_v50 = vld [vmem:[#allocation11 + $0x168] ss:$16 sps:$4 sm:$0xff]  }
  0xcb   :  { %1100 = vmatprep.subr.bf16.mxu0 %v5425_v53  ;;  %v6184_v53 = vld [vmem:[#allocation11 + $0x18c] ss:$16 sps:$4 sm:$0xff]  }
  0xcc   :  { %1062 = vmatpush1.bf16.msra.mxu1 %v5438_v60  ;;  %v6193_v60 = vld [vmem:[#allocation11 + $0x1c4] ss:$16 sps:$4 sm:$0xff]  }
  0xcd   :  { %5448 = vmatmul.mubr.msk.bf16.vlgmr.msra.gmra.mrb[24].mxu0 %vm359_vm0, %v7291_v22  ;;  %1141 = vmatprep.subr.bf16.mxu1 %v5427_v63  ;;  %v6191_v63 = vld [vmem:[#allocation11 + $0x1c0] ss:$16 sps:$4 sm:$0xff]  }
  0xce   :  { %1101 = vmatpush1.bf16.msra.mxu0 %v5424_v58  ;;  %1132 = vmatprep.mubr.bf16.mxu0 %v7112_v0  ;;  %v6188_v58 = vld [vmem:[#allocation11 + $0x1a8] ss:$16 sps:$4 sm:$0xff]  }
  0xcf   :  { %1102 = vmatprep.subr.bf16.mxu0 %v5441_v59  ;;  %5449 = vmatmul.mubr.msk.bf16.vlgmr.msra.gmra.mrb[24].mxu1 %vm359_vm0, %v7291_v22  ;;  %v6190_v59 = vld [vmem:[#allocation11 + $0x1ac] ss:$16 sps:$4 sm:$0xff]  }
  0xd0   :  { %1142 = vmatpush1.bf16.msra.mxu1 %v5426_v3  ;;  %1173 = vmatprep.mubr.bf16.mxu1 %v7112_v0  ;;  %v6124_v0 = vld [vmem:[#allocation11 + $0x4c] ss:$16 sps:$4 sm:$0xff]  }
  0xd1   :  { %1143 = vmatprep.subr.bf16.mxu1 %v5443_v5  ;;  %v6202_v3 = vld [vmem:[#allocation11 + $0x1ec] ss:$16 sps:$4 sm:$0xff]   ;;  %v6197_v5 = vld [vmem:[#allocation11 + $0x1e0] ss:$16 sps:$4 sm:$0xff]  }
  0xd2   :  { %1103 = vmatpush1.bf16.msra.mxu0 %v5440_v2  ;;  %v6199_v2 = vld [vmem:[#allocation11 + $0x1e4] ss:$16 sps:$4 sm:$0xff]  }
  0xd3   :  { %4340 = vmatprep.subr.bf16.mxu0 %v6109_v1  ;;  %v6194_v1 = vld [vmem:[#allocation11 + $0x1c8] ss:$16 sps:$4 sm:$0xff]  }
  0xd4   :  { %1144 = vmatpush1.bf16.msra.mxu1 %v5442_v8 }
  0xd5   :  { %5450 = vmatmul.mubr.msk.bf16.vlgmr.msra.gmra.mrb[28].mxu0 %vm359_vm0, %v7291_v22  ;;  %4668 = vmatprep.subr.bf16.mxu1 %v6112_v7  ;;  %v7320_v7 = vld [vmem:[#allocation10] sm:$0xff] }
  0xd6   :  { %4341 = vmatpush1.bf16.msra.mxu0 %v6107_v4  ;;  %v7318_v4 = vshrl.u32 %v1186_v62, 7 }
  0xd7   :  { %4342 = vmatprep.subr.bf16.mxu0 %v6115_v6  ;;  %5451 = vmatmul.mubr.msk.bf16.vlgmr.msra.gmra.mrb[28].mxu1 %vm359_vm0, %v7291_v22  ;;  %v6137_v22 = vld [vmem:[#allocation11 + $0xa0] ss:$16 sps:$4 sm:$0xff]   ;;  %v6200_v6 = vld [vmem:[#allocation11 + $0x1e8] ss:$16 sps:$4 sm:$0xff]  }
  0xd8   :  { %4669 = vmatpush1.bf16.msra.mxu1 %v6110_v11  ;;  %v1204_v8 = vsub.s32 4, %v7318_v4  ;;  %v6208_v11 = vld [vmem:[#allocation11 + $0x20c] ss:$16 sps:$4 sm:$0xff]  }
  0xd9   :  { %4670 = vmatprep.subr.bf16.mxu1 %v6118_v12 }
  0xda   :  { %4343 = vmatpush1.bf16.msra.mxu0 %v6113_v9  ;;  %v1208_v9 = vsub.s32 5, %v7318_v4  ;;  %v7325_v12 = vrot.slane %v7320_v7, %v1204_v8 }
  0xdb   :  { %4344 = vmatprep.subr.bf16.mxu0 %v6121_v10  ;;  %v6205_v10 = vld [vmem:[#allocation11 + $0x204] ss:$16 sps:$4 sm:$0xff]  }
  0xdc   :  { %4671 = vmatpush1.bf16.msra.mxu1 %v6116_v15 }
  0xdd   :  { %4672 = vmatprep.subr.bf16.mxu1 %v6124_v0 }
  0xde   :  { %4345 = vmatpush1.bf16.msra.mxu0 %v6119_v13  ;;  %v7328_v13 = vrot.slane %v7320_v7, %v1208_v9 }
  0xdf   :  { %4346 = vmatprep.subr.bf16.mxu0 %v6127_v14  ;;  %v7330_v14 = vld [vmem:[#allocation10 + $0x8] sm:$0xff] }
  0xe0   :  { %4673 = vmatpush1.bf16.msra.mxu1 %v6122_v18  ;;  %v7333_v15 = vrot.slane %v7330_v14, %v1204_v8  ;;  %v7336_v0 = vrot.slane %v7330_v14, %v1208_v9 }
  0xe1   :  { %4674 = vmatprep.subr.bf16.mxu1 %v6130_v19 }
  0xe2   :  { %4347 = vmatpush1.bf16.msra.mxu0 %v6125_v16  ;;  %v1212_v16 = vsub.s32 6, %v7318_v4 }
  0xe3   :  { %4348 = vmatprep.subr.bf16.mxu0 %v6133_v17  ;;  %v1216_v17 = vsub.s32 7, %v7318_v4 }
  0xe4   :  { %4675 = vmatpush1.bf16.msra.mxu1 %v6128_v24  ;;  %v7341_v18 = vrot.slane %v7320_v7, %v1212_v16 }
  0xe5   :  { %4676 = vmatprep.subr.bf16.mxu1 %v6136_v25  ;;  %v7344_v19 = vrot.slane %v7320_v7, %v1216_v17 }
  0xe6   :  { %4349 = vmatpush1.bf16.msra.mxu0 %v6131_v21  ;;  %v7347_v21 = vrot.slane %v7330_v14, %v1212_v16 }
  0xe7   :  { %4350 = vmatprep.subr.bf16.mxu0 %v6139_v23  ;;  %v7350_v23 = vrot.slane %v7330_v14, %v1216_v17 }
  0xe8   :  { %4677 = vmatpush1.bf16.msra.mxu1 %v6134_v26 }
  0xe9   :  { %4678 = vmatprep.subr.bf16.mxu1 %v6142_v27 }
  0xea   :  { %4351 = vmatpush1.bf16.msra.mxu0 %v6137_v22 }
  0xeb   :  { %4352 = vmatprep.subr.bf16.mxu0 %v6145_v29 }
  0xec   :  { %4679 = vmatpush1.bf16.msra.mxu1 %v6140_v28 }
  0xed   :  { %4680 = vmatprep.subr.bf16.mxu1 %v6148_v30 }
  0xee   :  { %4353 = vmatpush1.bf16.msra.mxu0 %v6143_v31 }
  0xef   :  { %4354 = vmatprep.subr.bf16.mxu0 %v6151_v34 }
  0xf0   :  { %4681 = vmatpush1.bf16.msra.mxu1 %v6146_v32 }
  0xf1   :  { %4682 = vmatprep.subr.bf16.mxu1 %v6154_v36 }
  0xf2   :  { %4355 = vmatpush1.bf16.msra.mxu0 %v6149_v33 }
  0xf3   :  { %4356 = vmatprep.subr.bf16.mxu0 %v6157_v37 }
  0xf4   :  { %4683 = vmatpush1.bf16.msra.mxu1 %v6152_v35 }
  0xf5   :  { %4684 = vmatprep.subr.bf16.mxu1 %v6160_v38 }
  0xf6   :  { %4357 = vmatpush1.bf16.msra.mxu0 %v6155_v20 }
  0xf7   :  { %4358 = vmatprep.subr.bf16.mxu0 %v6163_v41 }
  0xf8   :  { %4685 = vmatpush1.bf16.msra.mxu1 %v6158_v39 }
  0xf9   :  { %4686 = vmatprep.subr.bf16.mxu1 %v6166_v43 }
  0xfa   :  { %4359 = vmatpush1.bf16.msra.mxu0 %v6161_v40 }
  0xfb   :  { %4360 = vmatprep.subr.bf16.mxu0 %v6169_v44 }
  0xfc   :  { %4687 = vmatpush1.bf16.msra.mxu1 %v6164_v42 }
  0xfd   :  { %4688 = vmatprep.subr.bf16.mxu1 %v6172_v45 }
  0xfe   :  { %4361 = vmatpush1.bf16.msra.mxu0 %v6167_v46 }
  0xff   :  { %4362 = vmatprep.subr.bf16.mxu0 %v6175_v49 }
 0x100   :  { %4689 = vmatpush1.bf16.msra.mxu1 %v6170_v47 }
 0x101   :  { %4690 = vmatprep.subr.bf16.mxu1 %v6178_v51  ;;  %v7372_v51 = vsub.s32 1, %v7318_v4 }
 0x102   :  { %4363 = vmatpush1.bf16.msra.mxu0 %v6173_v48 }
 0x103   :  { %4364 = vmatprep.subr.bf16.mxu0 %v6181_v52 }
 0x104   :  { %4691 = vmatpush1.bf16.msra.mxu1 %v6176_v50  ;;  %v7369_v50 = vsub.s32 0, %v7318_v4 }
 0x105   :  { %4692 = vmatprep.subr.bf16.mxu1 %v6184_v53 }
 0x106   :  { %4365 = vmatpush1.bf16.msra.mxu0 %v6179_v54  ;;  %v1189_v53 = vrot.slane %v7320_v7, %v7369_v50 }
 0x107   :  { %4366 = vmatprep.subr.bf16.mxu0 %v6187_v57 }
 0x108   :  { %4693 = vmatpush1.bf16.msra.mxu1 %v6182_v55 }
 0x109   :  { %4694 = vmatprep.subr.bf16.mxu1 %v6190_v59 }
 0x10a   :  { %4367 = vmatpush1.bf16.msra.mxu0 %v6185_v56  ;;  %v1193_v56 = vrot.slane %v7320_v7, %v7372_v51 }
 0x10b   :  { %4368 = vmatprep.subr.bf16.mxu0 %v6193_v60 }
 0x10c   :  { %4695 = vmatpush1.bf16.msra.mxu1 %v6188_v58 }
 0x10d   :  { %4696 = vmatprep.subr.bf16.mxu1 %v6196_v61  ;;  %v7383_v61 = vsub.s32 2, %v7318_v4 }
 0x10e   :  { %4369 = vmatpush1.bf16.msra.mxu0 %v6191_v63 }
 0x10f   :  { %4370 = vmatprep.subr.bf16.mxu0 %v6199_v2  ;;  %v1197_v8 = vrot.slane %v7320_v7, %v7383_v61 }
 0x110   :  { %4697 = vmatpush1.bf16.msra.mxu1 %v6194_v1  ;;  %v7386_v1 = vsub.s32 3, %v7318_v4 }
 0x111   :  { %4698 = vmatprep.subr.bf16.mxu1 %v6202_v3 }
 0x112   :  { %4371 = vmatpush1.bf16.msra.mxu0 %v6197_v5  ;;  %v1201_v17 = vrot.slane %v7320_v7, %v7386_v1 }
 0x113   :  { %4381 = vmatprep.subr.bf16.mxu0 %v6205_v10  ;;  %v6203_v10 = vld [vmem:[#allocation11 + $0x200] ss:$16 sps:$4 sm:$0xff]  }
 0x114   :  { %4699 = vmatpush1.bf16.msra.mxu1 %v6200_v6 }
 0x115   :  { %4709 = vmatprep.subr.bf16.mxu1 %v6208_v11  ;;  %v6206_v11 = vld [vmem:[#allocation11 + $0x208] ss:$16 sps:$4 sm:$0xff]  }
 0x170   :  { %v397_v24 = vpop.f32.mrb[0].mxu0 }
 0x171   :  { %v399_v25 = vpop.f32.mrb[1].mxu0 }
 0x172   :  { %v401_v22 = vpop.f32.mrb[2].mxu0  ;;  %v438_v27 = vpop.f32.mrb[0].mxu1 }
 0x173   :  { %v402_v26 = vpop.f32.mrb[3].mxu0  ;;  %v440_v28 = vpop.f32.mrb[1].mxu1 }
 0x174   :  { %v442_v30 = vpop.f32.mrb[2].mxu1 }
 0x175   :  { %v443_v32 = vpop.f32.mrb[3].mxu1 }
 0x178   :  { %v479_v29 = vpop.f32.mrb[4].mxu0 }
 0x179   :  { %v481_v31 = vpop.f32.mrb[5].mxu0 }
 0x17a   :  { %v483_v33 = vpop.f32.mrb[6].mxu0  ;;  %v7352_v35 = vpop.f32.mrb[4].mxu1 }
 0x17b   :  { %v484_v34 = vpop.f32.mrb[7].mxu0  ;;  %v7354_v36 = vpop.f32.mrb[5].mxu1 }
 0x17c   :  { %v524_v38 = vpop.f32.mrb[6].mxu1 }
 0x17d   :  { %v525_v39 = vpop.f32.mrb[7].mxu1 }
 0x180   :  { %v7356_v37 = vpop.f32.mrb[8].mxu0 }
 0x181   :  { %v7358_v20 = vpop.f32.mrb[9].mxu0 }
 0x182   :  { %v565_v40 = vpop.f32.mrb[10].mxu0  ;;  %v7360_v42 = vpop.f32.mrb[8].mxu1 }
 0x183   :  { %v566_v41 = vpop.f32.mrb[11].mxu0  ;;  %v7362_v43 = vpop.f32.mrb[9].mxu1 }
 0x184   :  { %v606_v45 = vpop.f32.mrb[10].mxu1 }
 0x185   :  { %v607_v47 = vpop.f32.mrb[11].mxu1 }
 0x188   :  { %v7364_v44 = vpop.f32.mrb[12].mxu0 }
 0x189   :  { %v7366_v46 = vpop.f32.mrb[13].mxu0 }
 0x18a   :  { %v647_v48 = vpop.f32.mrb[14].mxu0  ;;  %v7374_v52 = vpop.f32.mrb[12].mxu1 }
 0x18b   :  { %v648_v49 = vpop.f32.mrb[15].mxu0  ;;  %v7378_v54 = vpop.f32.mrb[13].mxu1  ;;  %v6209_v48 = vld [vmem:[#allocation11 + $0x220] ss:$16 sps:$4 sm:$0xff]  }
 0x18c   :  { %v688_v57 = vpop.f32.mrb[14].mxu1 }
 0x18d   :  { %v689_v60 = vpop.f32.mrb[15].mxu1 }
 0x190   :  { %v888_v55 = vpop.f32.mrb[16].mxu0 }
 0x191   :  { %v889_v58 = vadd.f32 %v888_v55, %v397_v24  ;;  %v890_v59 = vpop.f32.mrb[17].mxu0  ;;  %v6211_v24 = vld [vmem:[#allocation11 + $0x224] ss:$16 sps:$4 sm:$0xff]  }
 0x192   :  { %v891_v62 = vadd.f32 %v890_v59, %v399_v25  ;;  %v892_v63 = vpop.f32.mrb[18].mxu0  ;;  %v929_v16 = vpop.f32.mrb[16].mxu1  ;;  %v6214_v25 = vld [vmem:[#allocation11 + $0x22c] ss:$16 sps:$4 sm:$0xff]   ;;  %v6218_v59 = vld [vmem:[#allocation11 + $0x248] ss:$16 sps:$4 sm:$0xff]  }
 0x193   :  { %v1266_v2 = vadd.f32 %v1189_v53, %v889_v58  ;;  %v893_v3 = vpop.f32.mrb[19].mxu0  ;;  %v930_v22 = vadd.f32 %v929_v16, %v438_v27  ;;  %v931_v26 = vpop.f32.mrb[17].mxu1  ;;  %v6212_v27 = vld [vmem:[#allocation11 + $0x228] ss:$16 sps:$4 sm:$0xff]   ;;  %v6217_v53 = vld [vmem:[#allocation11 + $0x244] ss:$16 sps:$4 sm:$0xff]  }
 0x194   :  { %v1267_v5 = vadd.f32 %v1193_v56, %v891_v62  ;;  %v932_v32 = vadd.f32 %v931_v26, %v440_v28  ;;  %v933_v33 = vpop.f32.mrb[18].mxu1  ;;  %v6215_v58 = vld [vmem:[#allocation11 + $0x240] ss:$16 sps:$4 sm:$0xff]   ;;  %v6224_v16 = vld [vmem:[#allocation11 + $0x268] ss:$16 sps:$4 sm:$0xff]  }
 0x195   :  { %v1282_v6 = vmax.f32 %v1266_v2, 0.0  ;;  %v7392_v40 = vadd.f32 %v1197_v8, %v930_v22  ;;  %v934_v41 = vpop.f32.mrb[19].mxu1 }
 0x196   :  { %v1283_v9 = vmax.f32 %v1267_v5, 0.0  ;;  %v1269_v7 = vadd.f32 %v1201_v17, %v932_v32  ;;  %v6223_v5 = vld [vmem:[#allocation11 + $0x264] ss:$16 sps:$4 sm:$0xff]   ;;  %v6238_v41 = vld [vmem:[#allocation11 + $0x2ac] ss:$16 sps:$4 sm:$0xff]  }
 0x197   :  { %v1298_v34 = vpack.c.bf16 %v1282_v6, %v1282_v6  ;;  %v6226_v6 = vld [vmem:[#allocation11 + $0x26c] ss:$16 sps:$4 sm:$0xff]   ;;  %v6229_v17 = vld [vmem:[#allocation11 + $0x284] ss:$16 sps:$4 sm:$0xff]  }
 0x198   :  { %v1299_v4 = vpack.c.bf16 %v1283_v9, %v1283_v9  ;;  %v970_v30 = vpop.f32.mrb[20].mxu0  ;;  %v1285_v55 = vmax.f32 %v1269_v7, 0.0 }
 0x199   :  { %v971_v38 = vadd.f32 %v970_v30, %v479_v29  ;;  %v972_v39 = vpop.f32.mrb[21].mxu0 }
 0x19a   :  { %v973_v45 = vadd.f32 %v972_v39, %v481_v31  ;;  %4372 = vmatprep.mubr.bf16.mxu0 %v1299_v4  ;;  %4700 = vmatprep.mubr.bf16.mxu1 %v1299_v4  ;;  %v974_v47 = vpop.f32.mrb[22].mxu0  ;;  %v6220_v31 = vld [vmem:[#allocation11 + $0x24c] ss:$16 sps:$4 sm:$0xff]   ;;  %v1301_v56 = vpack.c.bf16 %v1285_v55, %v1285_v55  ;;  %v1011_v57 = vpop.f32.mrb[20].mxu1  ;;  %v6235_v39 = vld [vmem:[#allocation11 + $0x2a4] ss:$16 sps:$4 sm:$0xff]  }
 0x19b   :  { %v7395_v49 = vadd.f32 %v7325_v12, %v971_v38  ;;  %4373 = vmatmul.mubr.bf16.vlgmr.msra.gmra.mrb[32].mxu0 %v1298_v34  ;;  %4701 = vmatmul.mubr.bf16.vlgmr.msra.gmra.mrb[32].mxu1 %v1298_v34  ;;  %v975_v28 = vpop.f32.mrb[23].mxu0  ;;  %v1012_v12 = vadd.f32 %v1011_v57, %v7352_v35  ;;  %v1013_v60 = vpop.f32.mrb[21].mxu1  ;;  %v6244_v55 = vld [vmem:[#allocation11 + $0x2cc] ss:$16 sps:$4 sm:$0xff]  }
 0x19c   :  { %v7398_v29 = vadd.f32 %v7328_v13, %v973_v45  ;;  %4382 = vmatpush1.bf16.msra.mxu0 %v6203_v10  ;;  %4710 = vmatpush1.bf16.msra.mxu1 %v6206_v11  ;;  %v1014_v63 = vadd.f32 %v1013_v60, %v7354_v36  ;;  %v1015_v13 = vpop.f32.mrb[22].mxu1  ;;  %v6221_v11 = vld [vmem:[#allocation11 + $0x260] ss:$16 sps:$4 sm:$0xff]   ;;  %v6236_v28 = vld [vmem:[#allocation11 + $0x2a8] ss:$16 sps:$4 sm:$0xff]  }
 0x19d   :  { %4383 = vmatprep.subr.bf16.mxu0 %v6211_v24  ;;  %4711 = vmatprep.subr.bf16.mxu1 %v6214_v25  ;;  %v7406_v8 = vadd.f32 %v7341_v18, %v1012_v12  ;;  %v1016_v9 = vpop.f32.mrb[23].mxu1  ;;  %v6232_v18 = vld [vmem:[#allocation11 + $0x28c] ss:$16 sps:$4 sm:$0xff]   ;;  %v1229_v24 = vrot.slane %v7330_v14, %v7383_v61  ;;  %v6230_v25 = vld [vmem:[#allocation11 + $0x288] ss:$16 sps:$4 sm:$0xff]  }
 0x19e   :  { %v7412_v36 = vadd.f32 %v7344_v19, %v1014_v63  ;;  %4413 = vmatprep.mubr.bf16.mxu0 %v1301_v56  ;;  %4741 = vmatprep.mubr.bf16.mxu1 %v1301_v56  ;;  %v1233_v19 = vrot.slane %v7330_v14, %v7386_v1  ;;  %v6250_v12 = vld [vmem:[#allocation11 + $0x2ec] ss:$16 sps:$4 sm:$0xff]   ;;  %v6245_v13 = vld [vmem:[#allocation11 + $0x2e0] ss:$16 sps:$4 sm:$0xff]  }
 0x19f   :  { %v6262_v9 = vld [vmem:[#allocation11 + $0x32c] ss:$16 sps:$4 sm:$0xff]  }
 0x1a0   :  { %4384 = vmatpush1.bf16.msra.mxu0 %v6209_v48  ;;  %4712 = vmatpush1.bf16.msra.mxu1 %v6212_v27  ;;  %v1052_v62 = vpop.f32.mrb[24].mxu0 }
 0x1a1   :  { %v7403_v2 = vadd.f32 %v1052_v62, %v7356_v37  ;;  %v1054_v3 = vpop.f32.mrb[25].mxu0  ;;  %4385 = vmatprep.subr.bf16.mxu0 %v6217_v53  ;;  %4713 = vmatprep.subr.bf16.mxu1 %v6220_v31  ;;  %v6241_v53 = vld [vmem:[#allocation11 + $0x2c4] ss:$16 sps:$4 sm:$0xff]   ;;  %v6239_v31 = vld [vmem:[#allocation11 + $0x2c0] ss:$16 sps:$4 sm:$0xff]  }
 0x1a2   :  { %v7409_v35 = vadd.f32 %v1054_v3, %v7358_v20  ;;  %v1056_v10 = vpop.f32.mrb[26].mxu0  ;;  %v6227_v20 = vld [vmem:[#allocation11 + $0x280] ss:$16 sps:$4 sm:$0xff]   ;;  %v1093_v22 = vpop.f32.mrb[24].mxu1  ;;  %v6253_v3 = vld [vmem:[#allocation11 + $0x304] ss:$16 sps:$4 sm:$0xff]  }
 0x1a3   :  { %v1057_v37 = vpop.f32.mrb[27].mxu0  ;;  %v1094_v26 = vadd.f32 %v1093_v22, %v7360_v42  ;;  %v1095_v4 = vpop.f32.mrb[25].mxu1  ;;  %v6233_v42 = vld [vmem:[#allocation11 + $0x2a0] ss:$16 sps:$4 sm:$0xff]   ;;  %v6277_v22 = vld [vmem:[#allocation11 + $0x384] ss:$16 sps:$4 sm:$0xff]  }
 0x1a4   :  { %4386 = vmatpush1.bf16.msra.mxu0 %v6215_v58  ;;  %4714 = vmatpush1.bf16.msra.mxu1 %v6218_v59  ;;  %v1096_v32 = vadd.f32 %v1095_v4, %v7362_v43  ;;  %v1097_v33 = vpop.f32.mrb[26].mxu1  ;;  %v6257_v10 = vld [vmem:[#allocation11 + $0x320] ss:$16 sps:$4 sm:$0xff]   ;;  %v6268_v37 = vld [vmem:[#allocation11 + $0x34c] ss:$16 sps:$4 sm:$0xff]  }
 0x1a5   :  { %4387 = vmatprep.subr.bf16.mxu0 %v6223_v5  ;;  %4715 = vmatprep.subr.bf16.mxu1 %v6226_v6  ;;  %v7421_v45 = vadd.f32 %v1229_v24, %v1094_v26  ;;  %v1098_v47 = vpop.f32.mrb[27].mxu1  ;;  %v6251_v5 = vld [vmem:[#allocation11 + $0x300] ss:$16 sps:$4 sm:$0xff]   ;;  %v6254_v6 = vld [vmem:[#allocation11 + $0x308] ss:$16 sps:$4 sm:$0xff]  }
 0x1a6   :  { %v7424_v48 = vadd.f32 %v1233_v19, %v1096_v32  ;;  %v6274_v24 = vld [vmem:[#allocation11 + $0x36c] ss:$16 sps:$4 sm:$0xff]   ;;  %v6275_v26 = vld [vmem:[#allocation11 + $0x380] ss:$16 sps:$4 sm:$0xff]   ;;  %v6278_v4 = vld [vmem:[#allocation11 + $0x388] ss:$16 sps:$4 sm:$0xff]  }
 0x1a7   :  { %v6280_v19 = vld [vmem:[#allocation11 + $0x38c] ss:$16 sps:$4 sm:$0xff]   ;;  %v6281_v33 = vld [vmem:[#allocation11 + $0x3a0] ss:$16 sps:$4 sm:$0xff]   ;;  %v6290_v47 = vld [vmem:[#allocation11 + $0x3c8] ss:$16 sps:$4 sm:$0xff]  }
 0x1a8   :  { %4388 = vmatpush1.bf16.msra.mxu0 %v6221_v11  ;;  %4716 = vmatpush1.bf16.msra.mxu1 %v6224_v16  ;;  %v1134_v30 = vpop.f32.mrb[28].mxu0  ;;  %v6260_v11 = vld [vmem:[#allocation11 + $0x328] ss:$16 sps:$4 sm:$0xff]   ;;  %v6263_v16 = vld [vmem:[#allocation11 + $0x340] ss:$16 sps:$4 sm:$0xff]  }
 0x1a9   :  { %v1135_v34 = vadd.f32 %v1134_v30, %v7364_v44  ;;  %v1136_v38 = vpop.f32.mrb[29].mxu0  ;;  %4389 = vmatprep.subr.bf16.mxu0 %v6229_v17  ;;  %4717 = vmatprep.subr.bf16.mxu1 %v6232_v18  ;;  %v6266_v17 = vld [vmem:[#allocation11 + $0x348] ss:$16 sps:$4 sm:$0xff]   ;;  %v6271_v18 = vld [vmem:[#allocation11 + $0x364] ss:$16 sps:$4 sm:$0xff]  }
 0x1aa   :  { %v1137_v14 = vadd.f32 %v1136_v38, %v7366_v46  ;;  %v1138_v7 = vpop.f32.mrb[30].mxu0  ;;  %v6242_v46 = vld [vmem:[#allocation11 + $0x2c8] ss:$16 sps:$4 sm:$0xff]   ;;  %v1175_v56 = vpop.f32.mrb[28].mxu1  ;;  %v6283_v30 = vld [vmem:[#allocation11 + $0x3a4] ss:$16 sps:$4 sm:$0xff]  }
 0x1ab   :  { %v7427_v27 = vadd.f32 %v7333_v15, %v1135_v34  ;;  %v1139_v43 = vpop.f32.mrb[31].mxu0  ;;  %v1176_v57 = vadd.f32 %v1175_v56, %v7374_v52  ;;  %v1177_v58 = vpop.f32.mrb[29].mxu1  ;;  %v6248_v52 = vld [vmem:[#allocation11 + $0x2e8] ss:$16 sps:$4 sm:$0xff]   ;;  %v6286_v32 = vld [vmem:[#allocation11 + $0x3ac] ss:$16 sps:$4 sm:$0xff]  }
 0x1ac   :  { %v7430_v44 = vadd.f32 %v7336_v0, %v1137_v14  ;;  %4390 = vmatpush1.bf16.msra.mxu0 %v6227_v20  ;;  %4718 = vmatpush1.bf16.msra.mxu1 %v6230_v25  ;;  %v1178_v15 = vadd.f32 %v1177_v58, %v7378_v54  ;;  %v1179_v59 = vpop.f32.mrb[30].mxu1  ;;  %v6247_v0 = vld [vmem:[#allocation11 + $0x2e4] ss:$16 sps:$4 sm:$0xff]   ;;  %v6256_v54 = vld [vmem:[#allocation11 + $0x30c] ss:$16 sps:$4 sm:$0xff]  }
 0x1ad   :  { %4391 = vmatprep.subr.bf16.mxu0 %v6235_v39  ;;  %4719 = vmatprep.subr.bf16.mxu1 %v6238_v41  ;;  %v7435_v60 = vadd.f32 %v7347_v21, %v1176_v57  ;;  %v1180_v62 = vpop.f32.mrb[31].mxu1  ;;  %v6259_v21 = vld [vmem:[#allocation11 + $0x324] ss:$16 sps:$4 sm:$0xff]   ;;  %v6269_v20 = vld [vmem:[#allocation11 + $0x360] ss:$16 sps:$4 sm:$0xff]  }
 0x1ae   :  { %v7438_v63 = vadd.f32 %v7350_v23, %v1178_v15  ;;  %v6265_v23 = vld [vmem:[#allocation11 + $0x344] ss:$16 sps:$4 sm:$0xff]   ;;  %v6272_v25 = vld [vmem:[#allocation11 + $0x368] ss:$16 sps:$4 sm:$0xff]   ;;  %v6292_v39 = vld [vmem:[#allocation11 + $0x3cc] ss:$16 sps:$4 sm:$0xff]  }
 0x1af   :  { %v6284_v34 = vld [vmem:[#allocation11 + $0x3a8] ss:$16 sps:$4 sm:$0xff]   ;;  %v6289_v38 = vld [vmem:[#allocation11 + $0x3c4] ss:$16 sps:$4 sm:$0xff]   ;;  %v6287_v41 = vld [vmem:[#allocation11 + $0x3c0] ss:$16 sps:$4 sm:$0xff]  }
 0x1b0   :  { %4392 = vmatpush1.bf16.msra.mxu0 %v6233_v42  ;;  %4720 = vmatpush1.bf16.msra.mxu1 %v6236_v28  ;;  %v6295_v14 = vld [vmem:[#allocation11 + $0x3e4] ss:$16 sps:$4 sm:$0xff]   ;;  %v6298_v42 = vld [vmem:[#allocation11 + $0x3ec] ss:$16 sps:$4 sm:$0xff]   ;;  %v6293_v7 = vld [vmem:[#allocation11 + $0x3e0] ss:$16 sps:$4 sm:$0xff]  }
 0x1b1   :  { %4393 = vmatprep.subr.bf16.mxu0 %v6241_v53  ;;  %4721 = vmatprep.subr.bf16.mxu1 %v6244_v55  ;;  %v6296_v43 = vld [vmem:[#allocation11 + $0x3e8] ss:$16 sps:$4 sm:$0xff]   ;;  %v1284_v28 = vmax.f32 %v7392_v40, 0.0  ;;  %v6301_v53 = vld [vmem:[#allocation11 + $0x404] ss:$16 sps:$4 sm:$0xff]  }
 0x1b2   :  { %v6304_v55 = vld [vmem:[#allocation11 + $0x40c] ss:$16 sps:$4 sm:$0xff]   ;;  %v6302_v57 = vld [vmem:[#allocation11 + $0x408] ss:$16 sps:$4 sm:$0xff]   ;;  %v6307_v15 = vld [vmem:[#allocation11 + $0x424] ss:$16 sps:$4 sm:$0xff]  }
 0x1b3   :  { %v1300_v56 = vpack.c.bf16 %v1284_v28, %v1284_v28  ;;  %v6310_v59 = vld [vmem:[#allocation11 + $0x42c] ss:$16 sps:$4 sm:$0xff]   ;;  %v6305_v40 = vld [vmem:[#allocation11 + $0x420] ss:$16 sps:$4 sm:$0xff]  }
 0x1b4   :  { %4394 = vmatpush1.bf16.msra.mxu0 %v6239_v31  ;;  %4722 = vmatpush1.bf16.msra.mxu1 %v6242_v46  ;;  %v1287_v31 = vmax.f32 %v7398_v29, 0.0  ;;  %v6299_v46 = vld [vmem:[#allocation11 + $0x400] ss:$16 sps:$4 sm:$0xff]   ;;  %v6316_v29 = vld [vmem:[#allocation11 + $0x44c] ss:$16 sps:$4 sm:$0xff]  }
 0x1b5   :  { %4395 = vmatprep.subr.bf16.mxu0 %v6247_v0  ;;  %4723 = vmatprep.subr.bf16.mxu1 %v6250_v12  ;;  %v6308_v0 = vld [vmem:[#allocation11 + $0x428] ss:$16 sps:$4 sm:$0xff]   ;;  %v6313_v12 = vld [vmem:[#allocation11 + $0x444] ss:$16 sps:$4 sm:$0xff]   ;;  %v6311_v62 = vld [vmem:[#allocation11 + $0x440] ss:$16 sps:$4 sm:$0xff]  }
 0x1b6   :  { %v1303_v58 = vpack.c.bf16 %v1287_v31, %v1287_v31  ;;  %v6370_v28 = vld [vmem:[#allocation11 + $0x56c] ss:$16 sps:$4 sm:$0xff]   ;;  %v6373_v31 = vld [vmem:[#allocation11 + $0x584] ss:$16 sps:$4 sm:$0xff]  }
 0x1b8   :  { %4396 = vmatpush1.bf16.msra.mxu0 %v6245_v13  ;;  %4724 = vmatpush1.bf16.msra.mxu1 %v6248_v52  ;;  %v6314_v13 = vld [vmem:[#allocation11 + $0x448] ss:$16 sps:$4 sm:$0xff]   ;;  %v6319_v52 = vld [vmem:[#allocation11 + $0x464] ss:$16 sps:$4 sm:$0xff]  }
 0x1b9   :  { %4397 = vmatprep.subr.bf16.mxu0 %v6253_v3  ;;  %4725 = vmatprep.subr.bf16.mxu1 %v6256_v54  ;;  %v6322_v3 = vld [vmem:[#allocation11 + $0x46c] ss:$16 sps:$4 sm:$0xff]   ;;  %v6317_v54 = vld [vmem:[#allocation11 + $0x460] ss:$16 sps:$4 sm:$0xff]  }
 0x1bc   :  { %4398 = vmatpush1.bf16.msra.mxu0 %v6251_v5  ;;  %4726 = vmatpush1.bf16.msra.mxu1 %v6254_v6  ;;  %v6320_v5 = vld [vmem:[#allocation11 + $0x468] ss:$16 sps:$4 sm:$0xff]   ;;  %v6325_v6 = vld [vmem:[#allocation11 + $0x484] ss:$16 sps:$4 sm:$0xff]  }
 0x1bd   :  { %4399 = vmatprep.subr.bf16.mxu0 %v6259_v21  ;;  %4727 = vmatprep.subr.bf16.mxu1 %v6262_v9  ;;  %v6328_v21 = vld [vmem:[#allocation11 + $0x48c] ss:$16 sps:$4 sm:$0xff]   ;;  %v6323_v9 = vld [vmem:[#allocation11 + $0x480] ss:$16 sps:$4 sm:$0xff]  }
 0x1c0   :  { %4400 = vmatpush1.bf16.msra.mxu0 %v6257_v10  ;;  %4728 = vmatpush1.bf16.msra.mxu1 %v6260_v11  ;;  %v6326_v10 = vld [vmem:[#allocation11 + $0x488] ss:$16 sps:$4 sm:$0xff]   ;;  %v6331_v11 = vld [vmem:[#allocation11 + $0x4a4] ss:$16 sps:$4 sm:$0xff]  }
 0x1c1   :  { %4401 = vmatprep.subr.bf16.mxu0 %v6265_v23  ;;  %4729 = vmatprep.subr.bf16.mxu1 %v6268_v37  ;;  %v6334_v23 = vld [vmem:[#allocation11 + $0x4ac] ss:$16 sps:$4 sm:$0xff]   ;;  %v6329_v37 = vld [vmem:[#allocation11 + $0x4a0] ss:$16 sps:$4 sm:$0xff]  }
 0x1c4   :  { %4402 = vmatpush1.bf16.msra.mxu0 %v6263_v16  ;;  %4730 = vmatpush1.bf16.msra.mxu1 %v6266_v17  ;;  %v6332_v16 = vld [vmem:[#allocation11 + $0x4a8] ss:$16 sps:$4 sm:$0xff]   ;;  %v6337_v17 = vld [vmem:[#allocation11 + $0x4c4] ss:$16 sps:$4 sm:$0xff]  }
 0x1c5   :  { %4403 = vmatprep.subr.bf16.mxu0 %v6271_v18  ;;  %4731 = vmatprep.subr.bf16.mxu1 %v6274_v24  ;;  %v6340_v18 = vld [vmem:[#allocation11 + $0x4cc] ss:$16 sps:$4 sm:$0xff]   ;;  %v6335_v24 = vld [vmem:[#allocation11 + $0x4c0] ss:$16 sps:$4 sm:$0xff]  }
 0x1c8   :  { %4404 = vmatpush1.bf16.msra.mxu0 %v6269_v20  ;;  %4732 = vmatpush1.bf16.msra.mxu1 %v6272_v25  ;;  %v6338_v20 = vld [vmem:[#allocation11 + $0x4c8] ss:$16 sps:$4 sm:$0xff]   ;;  %v6343_v25 = vld [vmem:[#allocation11 + $0x4e4] ss:$16 sps:$4 sm:$0xff]  }
 0x1c9   :  { %4405 = vmatprep.subr.bf16.mxu0 %v6277_v22  ;;  %4733 = vmatprep.subr.bf16.mxu1 %v6280_v19  ;;  %v6346_v22 = vld [vmem:[#allocation11 + $0x4ec] ss:$16 sps:$4 sm:$0xff]   ;;  %v6341_v19 = vld [vmem:[#allocation11 + $0x4e0] ss:$16 sps:$4 sm:$0xff]  }
 0x1cc   :  { %4406 = vmatpush1.bf16.msra.mxu0 %v6275_v26  ;;  %4734 = vmatpush1.bf16.msra.mxu1 %v6278_v4  ;;  %v6344_v26 = vld [vmem:[#allocation11 + $0x4e8] ss:$16 sps:$4 sm:$0xff]   ;;  %v6349_v4 = vld [vmem:[#allocation11 + $0x504] ss:$16 sps:$4 sm:$0xff]  }
 0x1cd   :  { %4407 = vmatprep.subr.bf16.mxu0 %v6283_v30  ;;  %4735 = vmatprep.subr.bf16.mxu1 %v6286_v32  ;;  %v6352_v30 = vld [vmem:[#allocation11 + $0x50c] ss:$16 sps:$4 sm:$0xff]   ;;  %v6347_v32 = vld [vmem:[#allocation11 + $0x500] ss:$16 sps:$4 sm:$0xff]  }
 0x1d0   :  { %4408 = vmatpush1.bf16.msra.mxu0 %v6281_v33  ;;  %4736 = vmatpush1.bf16.msra.mxu1 %v6284_v34  ;;  %v6350_v33 = vld [vmem:[#allocation11 + $0x508] ss:$16 sps:$4 sm:$0xff]   ;;  %v6355_v34 = vld [vmem:[#allocation11 + $0x524] ss:$16 sps:$4 sm:$0xff]  }
 0x1d1   :  { %4409 = vmatprep.subr.bf16.mxu0 %v6289_v38  ;;  %4737 = vmatprep.subr.bf16.mxu1 %v6292_v39  ;;  %v6358_v38 = vld [vmem:[#allocation11 + $0x52c] ss:$16 sps:$4 sm:$0xff]   ;;  %v6353_v39 = vld [vmem:[#allocation11 + $0x520] ss:$16 sps:$4 sm:$0xff]  }
 0x1d4   :  { %4410 = vmatpush1.bf16.msra.mxu0 %v6287_v41  ;;  %4738 = vmatpush1.bf16.msra.mxu1 %v6290_v47  ;;  %v6356_v41 = vld [vmem:[#allocation11 + $0x528] ss:$16 sps:$4 sm:$0xff]   ;;  %v6361_v47 = vld [vmem:[#allocation11 + $0x544] ss:$16 sps:$4 sm:$0xff]  }
 0x1d5   :  { %4411 = vmatprep.subr.bf16.mxu0 %v6295_v14  ;;  %4739 = vmatprep.subr.bf16.mxu1 %v6298_v42  ;;  %v6364_v14 = vld [vmem:[#allocation11 + $0x54c] ss:$16 sps:$4 sm:$0xff]   ;;  %v6359_v42 = vld [vmem:[#allocation11 + $0x540] ss:$16 sps:$4 sm:$0xff]  }
 0x1d8   :  { %4412 = vmatpush1.bf16.msra.mxu0 %v6293_v7  ;;  %4740 = vmatpush1.bf16.msra.mxu1 %v6296_v43  ;;  %v6362_v7 = vld [vmem:[#allocation11 + $0x548] ss:$16 sps:$4 sm:$0xff]   ;;  %v6367_v43 = vld [vmem:[#allocation11 + $0x564] ss:$16 sps:$4 sm:$0xff]  }
 0x1d9   :  { %4422 = vmatprep.subr.bf16.mxu0 %v6301_v53  ;;  %4750 = vmatprep.subr.bf16.mxu1 %v6304_v55  ;;  %v6365_v53 = vld [vmem:[#allocation11 + $0x560] ss:$16 sps:$4 sm:$0xff]   ;;  %v6368_v55 = vld [vmem:[#allocation11 + $0x568] ss:$16 sps:$4 sm:$0xff]  }
 0x1db   :  { %4414 = vmatmul.mubr.bf16.vlgmr.msra.gmra.mrb[32].mxu0 %v1300_v56  ;;  %4742 = vmatmul.mubr.bf16.vlgmr.msra.gmra.mrb[32].mxu1 %v1300_v56  ;;  %v6371_v56 = vld [vmem:[#allocation11 + $0x580] ss:$16 sps:$4 sm:$0xff]  }
 0x1dc   :  { %4423 = vmatpush1.bf16.msra.mxu0 %v6299_v46  ;;  %4454 = vmatprep.mubr.bf16.mxu0 %v1303_v58  ;;  %v6376_v46 = vld [vmem:[#allocation11 + $0x58c] ss:$16 sps:$4 sm:$0xff]  }
 0x1dd   :  { %4751 = vmatpush1.bf16.msra.mxu1 %v6302_v57  ;;  %4782 = vmatprep.mubr.bf16.mxu1 %v1303_v58  ;;  %v6374_v57 = vld [vmem:[#allocation11 + $0x588] ss:$16 sps:$4 sm:$0xff]   ;;  %v6379_v58 = vld [vmem:[#allocation11 + $0x5a4] ss:$16 sps:$4 sm:$0xff]  }
 0x1de   :  { %4424 = vmatprep.subr.bf16.mxu0 %v6307_v15  ;;  %4752 = vmatprep.subr.bf16.mxu1 %v6310_v59  ;;  %v6382_v15 = vld [vmem:[#allocation11 + $0x5ac] ss:$16 sps:$4 sm:$0xff]   ;;  %v6377_v59 = vld [vmem:[#allocation11 + $0x5a0] ss:$16 sps:$4 sm:$0xff]  }
 0x1e0   :  { %4425 = vmatpush1.bf16.msra.mxu0 %v6305_v40  ;;  %v6380_v40 = vld [vmem:[#allocation11 + $0x5a8] ss:$16 sps:$4 sm:$0xff]  }
 0x1e1   :  { %4753 = vmatpush1.bf16.msra.mxu1 %v6308_v0  ;;  %4426 = vmatprep.subr.bf16.mxu0 %v6313_v12  ;;  %v6385_v0 = vld [vmem:[#allocation11 + $0x5c4] ss:$16 sps:$4 sm:$0xff]   ;;  %v6388_v12 = vld [vmem:[#allocation11 + $0x5cc] ss:$16 sps:$4 sm:$0xff]  }
 0x1e2   :  { %4754 = vmatprep.subr.bf16.mxu1 %v6316_v29  ;;  %v6383_v29 = vld [vmem:[#allocation11 + $0x5c0] ss:$16 sps:$4 sm:$0xff]  }
 0x1e4   :  { %4427 = vmatpush1.bf16.msra.mxu0 %v6311_v62  ;;  %v6386_v62 = vld [vmem:[#allocation11 + $0x5c8] ss:$16 sps:$4 sm:$0xff]  }
 0x1e5   :  { %4755 = vmatpush1.bf16.msra.mxu1 %v6314_v13  ;;  %4428 = vmatprep.subr.bf16.mxu0 %v6319_v52  ;;  %v6391_v13 = vld [vmem:[#allocation11 + $0x5e4] ss:$16 sps:$4 sm:$0xff]   ;;  %v6394_v52 = vld [vmem:[#allocation11 + $0x5ec] ss:$16 sps:$4 sm:$0xff]  }
 0x1e6   :  { %4756 = vmatprep.subr.bf16.mxu1 %v6322_v3  ;;  %v6389_v3 = vld [vmem:[#allocation11 + $0x5e0] ss:$16 sps:$4 sm:$0xff]  }
 0x1e8   :  { %4429 = vmatpush1.bf16.msra.mxu0 %v6317_v54  ;;  %v1286_v54 = vmax.f32 %v7395_v49, 0.0  ;;  %v6401_v49 = vld [vmem:[#allocation11 + $0x620] ss:$16 sps:$4 sm:$0xff]  }
 0x1e9   :  { %4757 = vmatpush1.bf16.msra.mxu1 %v6320_v5  ;;  %4430 = vmatprep.subr.bf16.mxu0 %v6325_v6  ;;  %v6392_v5 = vld [vmem:[#allocation11 + $0x5e8] ss:$16 sps:$4 sm:$0xff]   ;;  %v6397_v6 = vld [vmem:[#allocation11 + $0x604] ss:$16 sps:$4 sm:$0xff]  }
 0x1ea   :  { %4758 = vmatprep.subr.bf16.mxu1 %v6328_v21  ;;  %v6400_v21 = vld [vmem:[#allocation11 + $0x60c] ss:$16 sps:$4 sm:$0xff]  }
 0x1ec   :  { %4431 = vmatpush1.bf16.msra.mxu0 %v6323_v9  ;;  %v1289_v9 = vmax.f32 %v7412_v36, 0.0  ;;  %v6412_v36 = vld [vmem:[#allocation11 + $0x64c] ss:$16 sps:$4 sm:$0xff]  }
 0x1ed   :  { %4759 = vmatpush1.bf16.msra.mxu1 %v6326_v10  ;;  %4432 = vmatprep.subr.bf16.mxu0 %v6331_v11  ;;  %v6395_v10 = vld [vmem:[#allocation11 + $0x600] ss:$16 sps:$4 sm:$0xff]   ;;  %v1302_v11 = vpack.c.bf16 %v1286_v54, %v1286_v54 }
 0x1ee   :  { %4760 = vmatprep.subr.bf16.mxu1 %v6334_v23  ;;  %v6398_v23 = vld [vmem:[#allocation11 + $0x608] ss:$16 sps:$4 sm:$0xff]   ;;  %v6461_v54 = vld [vmem:[#allocation11 + $0x760] ss:$16 sps:$4 sm:$0xff]  }
 0x1f0   :  { %4433 = vmatpush1.bf16.msra.mxu0 %v6329_v37  ;;  %v6403_v37 = vld [vmem:[#allocation11 + $0x624] ss:$16 sps:$4 sm:$0xff]  }
 0x1f1   :  { %4761 = vmatpush1.bf16.msra.mxu1 %v6332_v16  ;;  %4434 = vmatprep.subr.bf16.mxu0 %v6337_v17  ;;  %v1305_v16 = vpack.c.bf16 %v1289_v9, %v1289_v9  ;;  %v6406_v17 = vld [vmem:[#allocation11 + $0x62c] ss:$16 sps:$4 sm:$0xff]   ;;  %v6467_v9 = vld [vmem:[#allocation11 + $0x780] ss:$16 sps:$4 sm:$0xff]  }
 0x1f2   :  { %4762 = vmatprep.subr.bf16.mxu1 %v6340_v18  ;;  %v6404_v18 = vld [vmem:[#allocation11 + $0x628] ss:$16 sps:$4 sm:$0xff]  }
 0x1f4   :  { %4435 = vmatpush1.bf16.msra.mxu0 %v6335_v24  ;;  %v6409_v24 = vld [vmem:[#allocation11 + $0x644] ss:$16 sps:$4 sm:$0xff]  }
 0x1f5   :  { %4763 = vmatpush1.bf16.msra.mxu1 %v6338_v20  ;;  %4436 = vmatprep.subr.bf16.mxu0 %v6343_v25  ;;  %v6407_v20 = vld [vmem:[#allocation11 + $0x640] ss:$16 sps:$4 sm:$0xff]   ;;  %v6410_v25 = vld [vmem:[#allocation11 + $0x648] ss:$16 sps:$4 sm:$0xff]  }
 0x1f6   :  { %4764 = vmatprep.subr.bf16.mxu1 %v6346_v22  ;;  %v6415_v22 = vld [vmem:[#allocation11 + $0x664] ss:$16 sps:$4 sm:$0xff]  }
 0x1f8   :  { %4437 = vmatpush1.bf16.msra.mxu0 %v6341_v19  ;;  %v6418_v19 = vld [vmem:[#allocation11 + $0x66c] ss:$16 sps:$4 sm:$0xff]  }
 0x1f9   :  { %4765 = vmatpush1.bf16.msra.mxu1 %v6344_v26  ;;  %4438 = vmatprep.subr.bf16.mxu0 %v6349_v4  ;;  %v6413_v26 = vld [vmem:[#allocation11 + $0x660] ss:$16 sps:$4 sm:$0xff]   ;;  %v6416_v4 = vld [vmem:[#allocation11 + $0x668] ss:$16 sps:$4 sm:$0xff]  }
 0x1fa   :  { %4766 = vmatprep.subr.bf16.mxu1 %v6352_v30  ;;  %v6421_v30 = vld [vmem:[#allocation11 + $0x684] ss:$16 sps:$4 sm:$0xff]  }
 0x1fc   :  { %4439 = vmatpush1.bf16.msra.mxu0 %v6347_v32  ;;  %v6424_v32 = vld [vmem:[#allocation11 + $0x68c] ss:$16 sps:$4 sm:$0xff]  }
 0x1fd   :  { %4767 = vmatpush1.bf16.msra.mxu1 %v6350_v33  ;;  %4440 = vmatprep.subr.bf16.mxu0 %v6355_v34  ;;  %v6419_v33 = vld [vmem:[#allocation11 + $0x680] ss:$16 sps:$4 sm:$0xff]   ;;  %v6422_v34 = vld [vmem:[#allocation11 + $0x688] ss:$16 sps:$4 sm:$0xff]  }
 0x1fe   :  { %4768 = vmatprep.subr.bf16.mxu1 %v6358_v38  ;;  %v6427_v38 = vld [vmem:[#allocation11 + $0x6a4] ss:$16 sps:$4 sm:$0xff]  }
 0x200   :  { %4441 = vmatpush1.bf16.msra.mxu0 %v6353_v39  ;;  %v6430_v39 = vld [vmem:[#allocation11 + $0x6ac] ss:$16 sps:$4 sm:$0xff]  }
 0x201   :  { %4769 = vmatpush1.bf16.msra.mxu1 %v6356_v41  ;;  %4442 = vmatprep.subr.bf16.mxu0 %v6361_v47  ;;  %v6425_v41 = vld [vmem:[#allocation11 + $0x6a0] ss:$16 sps:$4 sm:$0xff]   ;;  %v6428_v47 = vld [vmem:[#allocation11 + $0x6a8] ss:$16 sps:$4 sm:$0xff]  }
 0x202   :  { %4770 = vmatprep.subr.bf16.mxu1 %v6364_v14  ;;  %v6433_v14 = vld [vmem:[#allocation11 + $0x6c4] ss:$16 sps:$4 sm:$0xff]  }
 0x204   :  { %4443 = vmatpush1.bf16.msra.mxu0 %v6359_v42  ;;  %v6436_v42 = vld [vmem:[#allocation11 + $0x6cc] ss:$16 sps:$4 sm:$0xff]  }
 0x205   :  { %4771 = vmatpush1.bf16.msra.mxu1 %v6362_v7  ;;  %4444 = vmatprep.subr.bf16.mxu0 %v6367_v43  ;;  %v6431_v7 = vld [vmem:[#allocation11 + $0x6c0] ss:$16 sps:$4 sm:$0xff]   ;;  %v6434_v43 = vld [vmem:[#allocation11 + $0x6c8] ss:$16 sps:$4 sm:$0xff]  }
 0x206   :  { %4772 = vmatprep.subr.bf16.mxu1 %v6370_v28  ;;  %v6439_v28 = vld [vmem:[#allocation11 + $0x6e4] ss:$16 sps:$4 sm:$0xff]  }
 0x208   :  { %4445 = vmatpush1.bf16.msra.mxu0 %v6365_v53  ;;  %v6442_v53 = vld [vmem:[#allocation11 + $0x6ec] ss:$16 sps:$4 sm:$0xff]  }
 0x209   :  { %4773 = vmatpush1.bf16.msra.mxu1 %v6368_v55  ;;  %4446 = vmatprep.subr.bf16.mxu0 %v6373_v31  ;;  %v6437_v55 = vld [vmem:[#allocation11 + $0x6e0] ss:$16 sps:$4 sm:$0xff]   ;;  %v6440_v31 = vld [vmem:[#allocation11 + $0x6e8] ss:$16 sps:$4 sm:$0xff]  }
 0x20a   :  { %4774 = vmatprep.subr.bf16.mxu1 %v6376_v46  ;;  %v6445_v46 = vld [vmem:[#allocation11 + $0x704] ss:$16 sps:$4 sm:$0xff]  }
 0x20c   :  { %4447 = vmatpush1.bf16.msra.mxu0 %v6371_v56  ;;  %v6448_v56 = vld [vmem:[#allocation11 + $0x70c] ss:$16 sps:$4 sm:$0xff]  }
 0x20d   :  { %4775 = vmatpush1.bf16.msra.mxu1 %v6374_v57  ;;  %4448 = vmatprep.subr.bf16.mxu0 %v6379_v58  ;;  %v6443_v57 = vld [vmem:[#allocation11 + $0x700] ss:$16 sps:$4 sm:$0xff]   ;;  %v6446_v58 = vld [vmem:[#allocation11 + $0x708] ss:$16 sps:$4 sm:$0xff]  }
 0x20e   :  { %4776 = vmatprep.subr.bf16.mxu1 %v6382_v15  ;;  %v6451_v15 = vld [vmem:[#allocation11 + $0x724] ss:$16 sps:$4 sm:$0xff]  }
 0x210   :  { %4449 = vmatpush1.bf16.msra.mxu0 %v6377_v59  ;;  %v6454_v59 = vld [vmem:[#allocation11 + $0x72c] ss:$16 sps:$4 sm:$0xff]  }
 0x211   :  { %4777 = vmatpush1.bf16.msra.mxu1 %v6380_v40  ;;  %4450 = vmatprep.subr.bf16.mxu0 %v6385_v0  ;;  %v6449_v40 = vld [vmem:[#allocation11 + $0x720] ss:$16 sps:$4 sm:$0xff]   ;;  %v6452_v0 = vld [vmem:[#allocation11 + $0x728] ss:$16 sps:$4 sm:$0xff]  }
 0x212   :  { %4778 = vmatprep.subr.bf16.mxu1 %v6388_v12  ;;  %v6457_v12 = vld [vmem:[#allocation11 + $0x744] ss:$16 sps:$4 sm:$0xff]  }
 0x214   :  { %4451 = vmatpush1.bf16.msra.mxu0 %v6383_v29  ;;  %v6460_v29 = vld [vmem:[#allocation11 + $0x74c] ss:$16 sps:$4 sm:$0xff]  }
 0x215   :  { %4779 = vmatpush1.bf16.msra.mxu1 %v6386_v62  ;;  %4452 = vmatprep.subr.bf16.mxu0 %v6391_v13  ;;  %v6455_v62 = vld [vmem:[#allocation11 + $0x740] ss:$16 sps:$4 sm:$0xff]   ;;  %v6458_v13 = vld [vmem:[#allocation11 + $0x748] ss:$16 sps:$4 sm:$0xff]  }
 0x216   :  { %4780 = vmatprep.subr.bf16.mxu1 %v6394_v52  ;;  %v6463_v52 = vld [vmem:[#allocation11 + $0x764] ss:$16 sps:$4 sm:$0xff]  }
 0x218   :  { %4453 = vmatpush1.bf16.msra.mxu0 %v6389_v3  ;;  %v6466_v3 = vld [vmem:[#allocation11 + $0x76c] ss:$16 sps:$4 sm:$0xff]  }
 0x219   :  { %4781 = vmatpush1.bf16.msra.mxu1 %v6392_v5  ;;  %4463 = vmatprep.subr.bf16.mxu0 %v6397_v6  ;;  %v6464_v5 = vld [vmem:[#allocation11 + $0x768] ss:$16 sps:$4 sm:$0xff]   ;;  %v6469_v6 = vld [vmem:[#allocation11 + $0x784] ss:$16 sps:$4 sm:$0xff]  }
 0x21a   :  { %4791 = vmatprep.subr.bf16.mxu1 %v6400_v21  ;;  %v6472_v21 = vld [vmem:[#allocation11 + $0x78c] ss:$16 sps:$4 sm:$0xff]  }
 0x21b   :  { %4455 = vmatmul.mubr.bf16.vlgmr.msra.gmra.mrb[32].mxu0 %v1302_v11 }
 0x21c   :  { %4783 = vmatmul.mubr.bf16.vlgmr.msra.gmra.mrb[32].mxu1 %v1302_v11  ;;  %4464 = vmatpush1.bf16.msra.mxu0 %v6395_v10  ;;  %v6470_v10 = vld [vmem:[#allocation11 + $0x788] ss:$16 sps:$4 sm:$0xff]   ;;  %v6475_v11 = vld [vmem:[#allocation11 + $0x7a4] ss:$16 sps:$4 sm:$0xff]  }
 0x21d   :  { %4495 = vmatprep.mubr.bf16.mxu0 %v1305_v16  ;;  %4792 = vmatpush1.bf16.msra.mxu1 %v6398_v23  ;;  %v6478_v23 = vld [vmem:[#allocation11 + $0x7ac] ss:$16 sps:$4 sm:$0xff]  }
 0x21e   :  { %4823 = vmatprep.mubr.bf16.mxu1 %v1305_v16  ;;  %4465 = vmatprep.subr.bf16.mxu0 %v6403_v37  ;;  %v6473_v37 = vld [vmem:[#allocation11 + $0x7a0] ss:$16 sps:$4 sm:$0xff]   ;;  %v6476_v16 = vld [vmem:[#allocation11 + $0x7a8] ss:$16 sps:$4 sm:$0xff]  }
 0x21f   :  { %4793 = vmatprep.subr.bf16.mxu1 %v6406_v17  ;;  %v6481_v17 = vld [vmem:[#allocation11 + $0x7c4] ss:$16 sps:$4 sm:$0xff]  }
 0x220   :  { %4466 = vmatpush1.bf16.msra.mxu0 %v6401_v49  ;;  %v6484_v49 = vld [vmem:[#allocation11 + $0x7cc] ss:$16 sps:$4 sm:$0xff]  }
 0x221   :  { %4794 = vmatpush1.bf16.msra.mxu1 %v6404_v18  ;;  %4467 = vmatprep.subr.bf16.mxu0 %v6409_v24  ;;  %v7444_v18 = vld [vmem:[#allocation10 + $0x8] sm:$0xff] }
 0x222   :  { %4795 = vmatprep.subr.bf16.mxu1 %v6412_v36  ;;  %v1225_v24 = vrot.slane %v7444_v18, %v7372_v51  ;;  %v6479_v36 = vld [vmem:[#allocation11 + $0x7c0] ss:$16 sps:$4 sm:$0xff]  }
 0x224   :  { %4468 = vmatpush1.bf16.msra.mxu0 %v6407_v20  ;;  %v6482_v20 = vld [vmem:[#allocation11 + $0x7c8] ss:$16 sps:$4 sm:$0xff]  }
 0x225   :  { %4796 = vmatpush1.bf16.msra.mxu1 %v6410_v25  ;;  %4469 = vmatprep.subr.bf16.mxu0 %v6415_v22  ;;  %v6487_v25 = vld [vmem:[#allocation11 + $0x7e4] ss:$16 sps:$4 sm:$0xff]   ;;  %v6490_v22 = vld [vmem:[#allocation11 + $0x7ec] ss:$16 sps:$4 sm:$0xff]  }
 0x226   :  { %4797 = vmatprep.subr.bf16.mxu1 %v6418_v19  ;;  %v1275_v19 = vadd.f32 %v1225_v24, %v7409_v35  ;;  %v6553_v24 = vld [vmem:[#allocation11 + $0x944] ss:$16 sps:$4 sm:$0xff]  }
 0x228   :  { %4470 = vmatpush1.bf16.msra.mxu0 %v6413_v26  ;;  %v6485_v26 = vld [vmem:[#allocation11 + $0x7e0] ss:$16 sps:$4 sm:$0xff]  }
 0x229   :  { %4798 = vmatpush1.bf16.msra.mxu1 %v6416_v4  ;;  %4471 = vmatprep.subr.bf16.mxu0 %v6421_v30  ;;  %v1288_v4 = vmax.f32 %v7406_v8, 0.0  ;;  %v6488_v30 = vld [vmem:[#allocation11 + $0x7e8] ss:$16 sps:$4 sm:$0xff]   ;;  %v6497_v8 = vld [vmem:[#allocation11 + $0x820] ss:$16 sps:$4 sm:$0xff]  }
 0x22a   :  { %4799 = vmatprep.subr.bf16.mxu1 %v6424_v32  ;;  %v6493_v32 = vld [vmem:[#allocation11 + $0x804] ss:$16 sps:$4 sm:$0xff]  }
 0x22c   :  { %4472 = vmatpush1.bf16.msra.mxu0 %v6419_v33  ;;  %v6496_v33 = vld [vmem:[#allocation11 + $0x80c] ss:$16 sps:$4 sm:$0xff]  }
 0x22d   :  { %4800 = vmatpush1.bf16.msra.mxu1 %v6422_v34  ;;  %4473 = vmatprep.subr.bf16.mxu0 %v6427_v38  ;;  %v1291_v34 = vmax.f32 %v1275_v19, 0.0  ;;  %v6491_v38 = vld [vmem:[#allocation11 + $0x800] ss:$16 sps:$4 sm:$0xff]   ;;  %v6562_v19 = vld [vmem:[#allocation11 + $0x96c] ss:$16 sps:$4 sm:$0xff]  }
 0x22e   :  { %4801 = vmatprep.subr.bf16.mxu1 %v6430_v39  ;;  %v1304_v39 = vpack.c.bf16 %v1288_v4, %v1288_v4  ;;  %v6560_v4 = vld [vmem:[#allocation11 + $0x968] ss:$16 sps:$4 sm:$0xff]  }
 0x22f   :  { %v1307_v35 = vpack.c.bf16 %v1291_v34, %v1291_v34  ;;  %v6566_v34 = vld [vmem:[#allocation11 + $0x988] ss:$16 sps:$4 sm:$0xff]  }
 0x230   :  { %4474 = vmatpush1.bf16.msra.mxu0 %v6425_v41  ;;  %v6494_v41 = vld [vmem:[#allocation11 + $0x808] ss:$16 sps:$4 sm:$0xff]  }
 0x231   :  { %4802 = vmatpush1.bf16.msra.mxu1 %v6428_v47  ;;  %4475 = vmatprep.subr.bf16.mxu0 %v6433_v14  ;;  %v6499_v47 = vld [vmem:[#allocation11 + $0x824] ss:$16 sps:$4 sm:$0xff]   ;;  %v6502_v14 = vld [vmem:[#allocation11 + $0x82c] ss:$16 sps:$4 sm:$0xff]  }
 0x232   :  { %4803 = vmatprep.subr.bf16.mxu1 %v6436_v42  ;;  %v6500_v42 = vld [vmem:[#allocation11 + $0x828] ss:$16 sps:$4 sm:$0xff]  }
 0x234   :  { %4476 = vmatpush1.bf16.msra.mxu0 %v6431_v7  ;;  %v6505_v7 = vld [vmem:[#allocation11 + $0x844] ss:$16 sps:$4 sm:$0xff]  }
 0x235   :  { %4804 = vmatpush1.bf16.msra.mxu1 %v6434_v43  ;;  %4477 = vmatprep.subr.bf16.mxu0 %v6439_v28  ;;  %v6508_v43 = vld [vmem:[#allocation11 + $0x84c] ss:$16 sps:$4 sm:$0xff]   ;;  %v6503_v28 = vld [vmem:[#allocation11 + $0x840] ss:$16 sps:$4 sm:$0xff]  }
 0x236   :  { %4805 = vmatprep.subr.bf16.mxu1 %v6442_v53  ;;  %v6506_v53 = vld [vmem:[#allocation11 + $0x848] ss:$16 sps:$4 sm:$0xff]  }
 0x238   :  { %4478 = vmatpush1.bf16.msra.mxu0 %v6437_v55  ;;  %v6511_v55 = vld [vmem:[#allocation11 + $0x864] ss:$16 sps:$4 sm:$0xff]  }
 0x239   :  { %4806 = vmatpush1.bf16.msra.mxu1 %v6440_v31  ;;  %4479 = vmatprep.subr.bf16.mxu0 %v6445_v46  ;;  %v6514_v31 = vld [vmem:[#allocation11 + $0x86c] ss:$16 sps:$4 sm:$0xff]   ;;  %v6509_v46 = vld [vmem:[#allocation11 + $0x860] ss:$16 sps:$4 sm:$0xff]  }
 0x23a   :  { %4807 = vmatprep.subr.bf16.mxu1 %v6448_v56  ;;  %v6512_v56 = vld [vmem:[#allocation11 + $0x868] ss:$16 sps:$4 sm:$0xff]  }
 0x23c   :  { %4480 = vmatpush1.bf16.msra.mxu0 %v6443_v57  ;;  %v6517_v57 = vld [vmem:[#allocation11 + $0x884] ss:$16 sps:$4 sm:$0xff]  }
 0x23d   :  { %4808 = vmatpush1.bf16.msra.mxu1 %v6446_v58  ;;  %4481 = vmatprep.subr.bf16.mxu0 %v6451_v15  ;;  %v6520_v58 = vld [vmem:[#allocation11 + $0x88c] ss:$16 sps:$4 sm:$0xff]   ;;  %v6515_v15 = vld [vmem:[#allocation11 + $0x880] ss:$16 sps:$4 sm:$0xff]  }
 0x23e   :  { %4809 = vmatprep.subr.bf16.mxu1 %v6454_v59  ;;  %v6518_v59 = vld [vmem:[#allocation11 + $0x888] ss:$16 sps:$4 sm:$0xff]  }
 0x240   :  { %4482 = vmatpush1.bf16.msra.mxu0 %v6449_v40  ;;  %v6523_v40 = vld [vmem:[#allocation11 + $0x8a4] ss:$16 sps:$4 sm:$0xff]  }
 0x241   :  { %4810 = vmatpush1.bf16.msra.mxu1 %v6452_v0  ;;  %4483 = vmatprep.subr.bf16.mxu0 %v6457_v12  ;;  %v6526_v0 = vld [vmem:[#allocation11 + $0x8ac] ss:$16 sps:$4 sm:$0xff]   ;;  %v6521_v12 = vld [vmem:[#allocation11 + $0x8a0] ss:$16 sps:$4 sm:$0xff]  }
 0x242   :  { %4811 = vmatprep.subr.bf16.mxu1 %v6460_v29  ;;  %v6524_v29 = vld [vmem:[#allocation11 + $0x8a8] ss:$16 sps:$4 sm:$0xff]  }
 0x244   :  { %4484 = vmatpush1.bf16.msra.mxu0 %v6455_v62  ;;  %v6529_v62 = vld [vmem:[#allocation11 + $0x8c4] ss:$16 sps:$4 sm:$0xff]  }
 0x245   :  { %4812 = vmatpush1.bf16.msra.mxu1 %v6458_v13  ;;  %4485 = vmatprep.subr.bf16.mxu0 %v6463_v52  ;;  %v6532_v13 = vld [vmem:[#allocation11 + $0x8cc] ss:$16 sps:$4 sm:$0xff]   ;;  %v6527_v52 = vld [vmem:[#allocation11 + $0x8c0] ss:$16 sps:$4 sm:$0xff]  }
 0x246   :  { %4813 = vmatprep.subr.bf16.mxu1 %v6466_v3  ;;  %v6530_v3 = vld [vmem:[#allocation11 + $0x8c8] ss:$16 sps:$4 sm:$0xff]  }
 0x248   :  { %4486 = vmatpush1.bf16.msra.mxu0 %v6461_v54  ;;  %v6535_v54 = vld [vmem:[#allocation11 + $0x8e4] ss:$16 sps:$4 sm:$0xff]  }
 0x249   :  { %4814 = vmatpush1.bf16.msra.mxu1 %v6464_v5  ;;  %4487 = vmatprep.subr.bf16.mxu0 %v6469_v6  ;;  %v6538_v5 = vld [vmem:[#allocation11 + $0x8ec] ss:$16 sps:$4 sm:$0xff]   ;;  %v6533_v6 = vld [vmem:[#allocation11 + $0x8e0] ss:$16 sps:$4 sm:$0xff]  }
 0x24a   :  { %4815 = vmatprep.subr.bf16.mxu1 %v6472_v21  ;;  %v6536_v21 = vld [vmem:[#allocation11 + $0x8e8] ss:$16 sps:$4 sm:$0xff]  }
 0x24c   :  { %4488 = vmatpush1.bf16.msra.mxu0 %v6467_v9  ;;  %v6541_v9 = vld [vmem:[#allocation11 + $0x904] ss:$16 sps:$4 sm:$0xff]  }
 0x24d   :  { %4816 = vmatpush1.bf16.msra.mxu1 %v6470_v10  ;;  %4489 = vmatprep.subr.bf16.mxu0 %v6475_v11  ;;  %v6544_v10 = vld [vmem:[#allocation11 + $0x90c] ss:$16 sps:$4 sm:$0xff]   ;;  %v6539_v11 = vld [vmem:[#allocation11 + $0x900] ss:$16 sps:$4 sm:$0xff]  }
 0x24e   :  { %4817 = vmatprep.subr.bf16.mxu1 %v6478_v23  ;;  %v6542_v23 = vld [vmem:[#allocation11 + $0x908] ss:$16 sps:$4 sm:$0xff]  }
 0x250   :  { %4490 = vmatpush1.bf16.msra.mxu0 %v6473_v37  ;;  %v6547_v37 = vld [vmem:[#allocation11 + $0x924] ss:$16 sps:$4 sm:$0xff]  }
 0x251   :  { %4818 = vmatpush1.bf16.msra.mxu1 %v6476_v16  ;;  %4491 = vmatprep.subr.bf16.mxu0 %v6481_v17  ;;  %v6550_v16 = vld [vmem:[#allocation11 + $0x92c] ss:$16 sps:$4 sm:$0xff]   ;;  %v6545_v17 = vld [vmem:[#allocation11 + $0x920] ss:$16 sps:$4 sm:$0xff]  }
 0x252   :  { %4819 = vmatprep.subr.bf16.mxu1 %v6484_v49  ;;  %v6548_v49 = vld [vmem:[#allocation11 + $0x928] ss:$16 sps:$4 sm:$0xff]  }
 0x254   :  { %4492 = vmatpush1.bf16.msra.mxu0 %v6479_v36  ;;  %v6556_v36 = vld [vmem:[#allocation11 + $0x94c] ss:$16 sps:$4 sm:$0xff]  }
 0x255   :  { %4820 = vmatpush1.bf16.msra.mxu1 %v6482_v20  ;;  %4493 = vmatprep.subr.bf16.mxu0 %v6487_v25  ;;  %v6551_v20 = vld [vmem:[#allocation11 + $0x940] ss:$16 sps:$4 sm:$0xff]   ;;  %v6554_v25 = vld [vmem:[#allocation11 + $0x948] ss:$16 sps:$4 sm:$0xff]  }
 0x256   :  { %4821 = vmatprep.subr.bf16.mxu1 %v6490_v22  ;;  %v6559_v22 = vld [vmem:[#allocation11 + $0x964] ss:$16 sps:$4 sm:$0xff]  }
 0x258   :  { %4494 = vmatpush1.bf16.msra.mxu0 %v6485_v26  ;;  %v6557_v26 = vld [vmem:[#allocation11 + $0x960] ss:$16 sps:$4 sm:$0xff]  }
 0x259   :  { %4822 = vmatpush1.bf16.msra.mxu1 %v6488_v30  ;;  %4504 = vmatprep.subr.bf16.mxu0 %v6493_v32  ;;  %v6565_v30 = vld [vmem:[#allocation11 + $0x984] ss:$16 sps:$4 sm:$0xff]   ;;  %v6568_v32 = vld [vmem:[#allocation11 + $0x98c] ss:$16 sps:$4 sm:$0xff]  }
 0x25a   :  { %4832 = vmatprep.subr.bf16.mxu1 %v6496_v33  ;;  %v6563_v33 = vld [vmem:[#allocation11 + $0x980] ss:$16 sps:$4 sm:$0xff]  }
 0x25b   :  { %4496 = vmatmul.mubr.bf16.vlgmr.msra.gmra.mrb[32].mxu0 %v1304_v39 }
 0x25c   :  { %4824 = vmatmul.mubr.bf16.vlgmr.msra.gmra.mrb[32].mxu1 %v1304_v39  ;;  %4505 = vmatpush1.bf16.msra.mxu0 %v6491_v38  ;;  %v6571_v38 = vld [vmem:[#allocation11 + $0x9a4] ss:$16 sps:$4 sm:$0xff]   ;;  %v6574_v39 = vld [vmem:[#allocation11 + $0x9ac] ss:$16 sps:$4 sm:$0xff]  }
 0x25d   :  { %4536 = vmatprep.mubr.bf16.mxu0 %v1307_v35  ;;  %4833 = vmatpush1.bf16.msra.mxu1 %v6494_v41  ;;  %v6569_v41 = vld [vmem:[#allocation11 + $0x9a0] ss:$16 sps:$4 sm:$0xff]  }
 0x25e   :  { %4864 = vmatprep.mubr.bf16.mxu1 %v1307_v35  ;;  %4506 = vmatprep.subr.bf16.mxu0 %v6499_v47  ;;  %v1221_v47 = vrot.slane %v7444_v18, %v7369_v50  ;;  %v6572_v35 = vld [vmem:[#allocation11 + $0x9a8] ss:$16 sps:$4 sm:$0xff]  }
 0x25f   :  { %4834 = vmatprep.subr.bf16.mxu1 %v6502_v14  ;;  %v6577_v14 = vld [vmem:[#allocation11 + $0x9c4] ss:$16 sps:$4 sm:$0xff]   ;;  %v6584_v18 = vld [vmem:[#allocation11 + $0x9e8] ss:$16 sps:$4 sm:$0xff]  }
 0x260   :  { %4507 = vmatpush1.bf16.msra.mxu0 %v6497_v8  ;;  %v6580_v8 = vld [vmem:[#allocation11 + $0x9cc] ss:$16 sps:$4 sm:$0xff]  }
 0x261   :  { %4835 = vmatpush1.bf16.msra.mxu1 %v6500_v42  ;;  %4508 = vmatprep.subr.bf16.mxu0 %v6505_v7  ;;  %v6575_v42 = vld [vmem:[#allocation11 + $0x9c0] ss:$16 sps:$4 sm:$0xff]   ;;  %v1274_v7 = vadd.f32 %v1221_v47, %v7403_v2  ;;  %v6649_v47 = vld [vmem:[#allocation11 + $0xb44] ss:$16 sps:$4 sm:$0xff]  }
 0x262   :  { %4836 = vmatprep.subr.bf16.mxu1 %v6508_v43  ;;  %v6578_v43 = vld [vmem:[#allocation11 + $0x9c8] ss:$16 sps:$4 sm:$0xff]  }
 0x264   :  { %4509 = vmatpush1.bf16.msra.mxu0 %v6503_v28  ;;  %v6583_v28 = vld [vmem:[#allocation11 + $0x9e4] ss:$16 sps:$4 sm:$0xff]  }
 0x265   :  { %4837 = vmatpush1.bf16.msra.mxu1 %v6506_v53  ;;  %4510 = vmatprep.subr.bf16.mxu0 %v6511_v55  ;;  %v6586_v53 = vld [vmem:[#allocation11 + $0x9ec] ss:$16 sps:$4 sm:$0xff]   ;;  %v6581_v55 = vld [vmem:[#allocation11 + $0x9e0] ss:$16 sps:$4 sm:$0xff]  }
 0x266   :  { %4838 = vmatprep.subr.bf16.mxu1 %v6514_v31  ;;  %v1290_v31 = vmax.f32 %v1274_v7, 0.0  ;;  %v6658_v7 = vld [vmem:[#allocation11 + $0xb6c] ss:$16 sps:$4 sm:$0xff]  }
 0x268   :  { %4511 = vmatpush1.bf16.msra.mxu0 %v6509_v46  ;;  %v6589_v46 = vld [vmem:[#allocation11 + $0xa04] ss:$16 sps:$4 sm:$0xff]   ;;  %v1306_v2 = vpack.c.bf16 %v1290_v31, %v1290_v31  ;;  %v6659_v31 = vld [vmem:[#allocation11 + $0xb80] ss:$16 sps:$4 sm:$0xff]  }
 0x269   :  { %4839 = vmatpush1.bf16.msra.mxu1 %v6512_v56  ;;  %4512 = vmatprep.subr.bf16.mxu0 %v6517_v57  ;;  %v6592_v56 = vld [vmem:[#allocation11 + $0xa0c] ss:$16 sps:$4 sm:$0xff]   ;;  %v1293_v57 = vmax.f32 %v7424_v48, 0.0 }
 0x26a   :  { %4840 = vmatprep.subr.bf16.mxu1 %v6520_v58  ;;  %v6587_v58 = vld [vmem:[#allocation11 + $0xa00] ss:$16 sps:$4 sm:$0xff]   ;;  %v6604_v48 = vld [vmem:[#allocation11 + $0xa4c] ss:$16 sps:$4 sm:$0xff]  }
 0x26c   :  { %4513 = vmatpush1.bf16.msra.mxu0 %v6515_v15  ;;  %v6590_v15 = vld [vmem:[#allocation11 + $0xa08] ss:$16 sps:$4 sm:$0xff]  }
 0x26d   :  { %4841 = vmatpush1.bf16.msra.mxu1 %v6518_v59  ;;  %4514 = vmatprep.subr.bf16.mxu0 %v6523_v40  ;;  %v6595_v59 = vld [vmem:[#allocation11 + $0xa24] ss:$16 sps:$4 sm:$0xff]   ;;  %v1309_v40 = vpack.c.bf16 %v1293_v57, %v1293_v57  ;;  %v6665_v57 = vld [vmem:[#allocation11 + $0xba0] ss:$16 sps:$4 sm:$0xff]  }
 0x26e   :  { %4842 = vmatprep.subr.bf16.mxu1 %v6526_v0  ;;  %v6598_v0 = vld [vmem:[#allocation11 + $0xa2c] ss:$16 sps:$4 sm:$0xff]  }
 0x270   :  { %4515 = vmatpush1.bf16.msra.mxu0 %v6521_v12  ;;  %v6593_v12 = vld [vmem:[#allocation11 + $0xa20] ss:$16 sps:$4 sm:$0xff]  }
 0x271   :  { %4843 = vmatpush1.bf16.msra.mxu1 %v6524_v29  ;;  %4516 = vmatprep.subr.bf16.mxu0 %v6529_v62  ;;  %v6596_v29 = vld [vmem:[#allocation11 + $0xa28] ss:$16 sps:$4 sm:$0xff]   ;;  %v6601_v62 = vld [vmem:[#allocation11 + $0xa44] ss:$16 sps:$4 sm:$0xff]  }
 0x272   :  { %4844 = vmatprep.subr.bf16.mxu1 %v6532_v13  ;;  %v6599_v13 = vld [vmem:[#allocation11 + $0xa40] ss:$16 sps:$4 sm:$0xff]  }
 0x274   :  { %4517 = vmatpush1.bf16.msra.mxu0 %v6527_v52  ;;  %v6602_v52 = vld [vmem:[#allocation11 + $0xa48] ss:$16 sps:$4 sm:$0xff]  }
 0x275   :  { %4845 = vmatpush1.bf16.msra.mxu1 %v6530_v3  ;;  %4518 = vmatprep.subr.bf16.mxu0 %v6535_v54  ;;  %v6607_v3 = vld [vmem:[#allocation11 + $0xa64] ss:$16 sps:$4 sm:$0xff]   ;;  %v6610_v54 = vld [vmem:[#allocation11 + $0xa6c] ss:$16 sps:$4 sm:$0xff]  }
 0x276   :  { %4846 = vmatprep.subr.bf16.mxu1 %v6538_v5  ;;  %v6605_v5 = vld [vmem:[#allocation11 + $0xa60] ss:$16 sps:$4 sm:$0xff]  }
 0x278   :  { %4519 = vmatpush1.bf16.msra.mxu0 %v6533_v6  ;;  %v6608_v6 = vld [vmem:[#allocation11 + $0xa68] ss:$16 sps:$4 sm:$0xff]  }
 0x279   :  { %4847 = vmatpush1.bf16.msra.mxu1 %v6536_v21  ;;  %4520 = vmatprep.subr.bf16.mxu0 %v6541_v9  ;;  %v6613_v21 = vld [vmem:[#allocation11 + $0xa84] ss:$16 sps:$4 sm:$0xff]   ;;  %v6616_v9 = vld [vmem:[#allocation11 + $0xa8c] ss:$16 sps:$4 sm:$0xff]  }
 0x27a   :  { %4848 = vmatprep.subr.bf16.mxu1 %v6544_v10  ;;  %v6611_v10 = vld [vmem:[#allocation11 + $0xa80] ss:$16 sps:$4 sm:$0xff]  }
 0x27c   :  { %4521 = vmatpush1.bf16.msra.mxu0 %v6539_v11  ;;  %v6614_v11 = vld [vmem:[#allocation11 + $0xa88] ss:$16 sps:$4 sm:$0xff]  }
 0x27d   :  { %4849 = vmatpush1.bf16.msra.mxu1 %v6542_v23  ;;  %4522 = vmatprep.subr.bf16.mxu0 %v6547_v37  ;;  %v6619_v23 = vld [vmem:[#allocation11 + $0xaa4] ss:$16 sps:$4 sm:$0xff]   ;;  %v6622_v37 = vld [vmem:[#allocation11 + $0xaac] ss:$16 sps:$4 sm:$0xff]  }
 0x27e   :  { %4850 = vmatprep.subr.bf16.mxu1 %v6550_v16  ;;  %v6617_v16 = vld [vmem:[#allocation11 + $0xaa0] ss:$16 sps:$4 sm:$0xff]  }
 0x280   :  { %4523 = vmatpush1.bf16.msra.mxu0 %v6545_v17  ;;  %v6620_v17 = vld [vmem:[#allocation11 + $0xaa8] ss:$16 sps:$4 sm:$0xff]  }
 0x281   :  { %4851 = vmatpush1.bf16.msra.mxu1 %v6548_v49  ;;  %4524 = vmatprep.subr.bf16.mxu0 %v6553_v24  ;;  %v6625_v49 = vld [vmem:[#allocation11 + $0xac4] ss:$16 sps:$4 sm:$0xff]   ;;  %v6628_v24 = vld [vmem:[#allocation11 + $0xacc] ss:$16 sps:$4 sm:$0xff]  }
 0x282   :  { %4852 = vmatprep.subr.bf16.mxu1 %v6556_v36  ;;  %v6623_v36 = vld [vmem:[#allocation11 + $0xac0] ss:$16 sps:$4 sm:$0xff]  }
 0x284   :  { %4525 = vmatpush1.bf16.msra.mxu0 %v6551_v20  ;;  %v6626_v20 = vld [vmem:[#allocation11 + $0xac8] ss:$16 sps:$4 sm:$0xff]  }
 0x285   :  { %4853 = vmatpush1.bf16.msra.mxu1 %v6554_v25  ;;  %4526 = vmatprep.subr.bf16.mxu0 %v6559_v22  ;;  %v6631_v25 = vld [vmem:[#allocation11 + $0xae4] ss:$16 sps:$4 sm:$0xff]   ;;  %v6634_v22 = vld [vmem:[#allocation11 + $0xaec] ss:$16 sps:$4 sm:$0xff]  }
 0x286   :  { %4854 = vmatprep.subr.bf16.mxu1 %v6562_v19  ;;  %v6629_v19 = vld [vmem:[#allocation11 + $0xae0] ss:$16 sps:$4 sm:$0xff]  }
 0x288   :  { %4527 = vmatpush1.bf16.msra.mxu0 %v6557_v26  ;;  %v6632_v26 = vld [vmem:[#allocation11 + $0xae8] ss:$16 sps:$4 sm:$0xff]  }
 0x289   :  { %4855 = vmatpush1.bf16.msra.mxu1 %v6560_v4  ;;  %4528 = vmatprep.subr.bf16.mxu0 %v6565_v30  ;;  %v6637_v4 = vld [vmem:[#allocation11 + $0xb04] ss:$16 sps:$4 sm:$0xff]   ;;  %v6640_v30 = vld [vmem:[#allocation11 + $0xb0c] ss:$16 sps:$4 sm:$0xff]  }
 0x28a   :  { %4856 = vmatprep.subr.bf16.mxu1 %v6568_v32  ;;  %v6635_v32 = vld [vmem:[#allocation11 + $0xb00] ss:$16 sps:$4 sm:$0xff]  }
 0x28c   :  { %4529 = vmatpush1.bf16.msra.mxu0 %v6563_v33  ;;  %v6638_v33 = vld [vmem:[#allocation11 + $0xb08] ss:$16 sps:$4 sm:$0xff]  }
 0x28d   :  { %4857 = vmatpush1.bf16.msra.mxu1 %v6566_v34  ;;  %4530 = vmatprep.subr.bf16.mxu0 %v6571_v38  ;;  %v6643_v34 = vld [vmem:[#allocation11 + $0xb24] ss:$16 sps:$4 sm:$0xff]   ;;  %v6646_v38 = vld [vmem:[#allocation11 + $0xb2c] ss:$16 sps:$4 sm:$0xff]  }
 0x28e   :  { %4858 = vmatprep.subr.bf16.mxu1 %v6574_v39  ;;  %v6641_v39 = vld [vmem:[#allocation11 + $0xb20] ss:$16 sps:$4 sm:$0xff]  }
 0x290   :  { %4531 = vmatpush1.bf16.msra.mxu0 %v6569_v41  ;;  %v6644_v41 = vld [vmem:[#allocation11 + $0xb28] ss:$16 sps:$4 sm:$0xff]  }
 0x291   :  { %4859 = vmatpush1.bf16.msra.mxu1 %v6572_v35  ;;  %4532 = vmatprep.subr.bf16.mxu0 %v6577_v14  ;;  %v6652_v35 = vld [vmem:[#allocation11 + $0xb4c] ss:$16 sps:$4 sm:$0xff]   ;;  %v6647_v14 = vld [vmem:[#allocation11 + $0xb40] ss:$16 sps:$4 sm:$0xff]  }
 0x292   :  { %4860 = vmatprep.subr.bf16.mxu1 %v6580_v8  ;;  %v6650_v8 = vld [vmem:[#allocation11 + $0xb48] ss:$16 sps:$4 sm:$0xff]  }
 0x294   :  { %4533 = vmatpush1.bf16.msra.mxu0 %v6575_v42  ;;  %v6655_v42 = vld [vmem:[#allocation11 + $0xb64] ss:$16 sps:$4 sm:$0xff]  }
 0x295   :  { %4861 = vmatpush1.bf16.msra.mxu1 %v6578_v43  ;;  %4534 = vmatprep.subr.bf16.mxu0 %v6583_v28  ;;  %v6653_v43 = vld [vmem:[#allocation11 + $0xb60] ss:$16 sps:$4 sm:$0xff]   ;;  %v6656_v28 = vld [vmem:[#allocation11 + $0xb68] ss:$16 sps:$4 sm:$0xff]  }
 0x296   :  { %4862 = vmatprep.subr.bf16.mxu1 %v6586_v53  ;;  %v6661_v53 = vld [vmem:[#allocation11 + $0xb84] ss:$16 sps:$4 sm:$0xff]  }
 0x298   :  { %4535 = vmatpush1.bf16.msra.mxu0 %v6581_v55  ;;  %v6664_v55 = vld [vmem:[#allocation11 + $0xb8c] ss:$16 sps:$4 sm:$0xff]  }
 0x299   :  { %4863 = vmatpush1.bf16.msra.mxu1 %v6584_v18  ;;  %4545 = vmatprep.subr.bf16.mxu0 %v6589_v46  ;;  %v6662_v18 = vld [vmem:[#allocation11 + $0xb88] ss:$16 sps:$4 sm:$0xff]   ;;  %v6667_v46 = vld [vmem:[#allocation11 + $0xba4] ss:$16 sps:$4 sm:$0xff]  }
 0x29a   :  { %4873 = vmatprep.subr.bf16.mxu1 %v6592_v56  ;;  %v6670_v56 = vld [vmem:[#allocation11 + $0xbac] ss:$16 sps:$4 sm:$0xff]  }
 0x29b   :  { %4537 = vmatmul.mubr.bf16.vlgmr.msra.gmra.mrb[32].mxu0 %v1306_v2 }
 0x29c   :  { %4865 = vmatmul.mubr.bf16.vlgmr.msra.gmra.mrb[32].mxu1 %v1306_v2  ;;  %4546 = vmatpush1.bf16.msra.mxu0 %v6587_v58  ;;  %v6668_v58 = vld [vmem:[#allocation11 + $0xba8] ss:$16 sps:$4 sm:$0xff]   ;;  %v6673_v2 = vld [vmem:[#allocation11 + $0xbc4] ss:$16 sps:$4 sm:$0xff]  }
 0x29d   :  { %4577 = vmatprep.mubr.bf16.mxu0 %v1309_v40  ;;  %4874 = vmatpush1.bf16.msra.mxu1 %v6590_v15  ;;  %v6676_v15 = vld [vmem:[#allocation11 + $0xbcc] ss:$16 sps:$4 sm:$0xff]  }
 0x29e   :  { %4905 = vmatprep.mubr.bf16.mxu1 %v1309_v40  ;;  %4547 = vmatprep.subr.bf16.mxu0 %v6595_v59  ;;  %v6671_v59 = vld [vmem:[#allocation11 + $0xbc0] ss:$16 sps:$4 sm:$0xff]   ;;  %v6674_v40 = vld [vmem:[#allocation11 + $0xbc8] ss:$16 sps:$4 sm:$0xff]  }
 0x29f   :  { %4875 = vmatprep.subr.bf16.mxu1 %v6598_v0  ;;  %v6679_v0 = vld [vmem:[#allocation11 + $0xbe4] ss:$16 sps:$4 sm:$0xff]  }
 0x2a0   :  { %4548 = vmatpush1.bf16.msra.mxu0 %v6593_v12  ;;  %v6682_v12 = vld [vmem:[#allocation11 + $0xbec] ss:$16 sps:$4 sm:$0xff]  }
 0x2a1   :  { %4876 = vmatpush1.bf16.msra.mxu1 %v6596_v29  ;;  %4549 = vmatprep.subr.bf16.mxu0 %v6601_v62  ;;  %v6677_v29 = vld [vmem:[#allocation11 + $0xbe0] ss:$16 sps:$4 sm:$0xff]   ;;  %v1292_v62 = vmax.f32 %v7421_v45, 0.0 }
 0x2a2   :  { %4877 = vmatprep.subr.bf16.mxu1 %v6604_v48  ;;  %v6680_v48 = vld [vmem:[#allocation11 + $0xbe8] ss:$16 sps:$4 sm:$0xff]   ;;  %v6689_v45 = vld [vmem:[#allocation11 + $0xc20] ss:$16 sps:$4 sm:$0xff]  }
 0x2a4   :  { %4550 = vmatpush1.bf16.msra.mxu0 %v6599_v13  ;;  %v6685_v13 = vld [vmem:[#allocation11 + $0xc04] ss:$16 sps:$4 sm:$0xff]  }
 0x2a5   :  { %4878 = vmatpush1.bf16.msra.mxu1 %v6602_v52  ;;  %4551 = vmatprep.subr.bf16.mxu0 %v6607_v3  ;;  %v6688_v52 = vld [vmem:[#allocation11 + $0xc0c] ss:$16 sps:$4 sm:$0xff]   ;;  %v1295_v3 = vmax.f32 %v7430_v44, 0.0 }
 0x2a6   :  { %4879 = vmatprep.subr.bf16.mxu1 %v6610_v54  ;;  %v6683_v54 = vld [vmem:[#allocation11 + $0xc00] ss:$16 sps:$4 sm:$0xff]   ;;  %v6700_v44 = vld [vmem:[#allocation11 + $0xc4c] ss:$16 sps:$4 sm:$0xff]  }
 0x2a8   :  { %4552 = vmatpush1.bf16.msra.mxu0 %v6605_v5  ;;  %v1308_v5 = vpack.c.bf16 %v1292_v62, %v1292_v62  ;;  %v6763_v62 = vld [vmem:[#allocation11 + $0xda4] ss:$16 sps:$4 sm:$0xff]  }
 0x2a9   :  { %4880 = vmatpush1.bf16.msra.mxu1 %v6608_v6  ;;  %4553 = vmatprep.subr.bf16.mxu0 %v6613_v21  ;;  %v6686_v6 = vld [vmem:[#allocation11 + $0xc08] ss:$16 sps:$4 sm:$0xff]   ;;  %v6691_v21 = vld [vmem:[#allocation11 + $0xc24] ss:$16 sps:$4 sm:$0xff]  }
 0x2aa   :  { %4881 = vmatprep.subr.bf16.mxu1 %v6616_v9  ;;  %v1311_v9 = vpack.c.bf16 %v1295_v3, %v1295_v3  ;;  %v6769_v3 = vld [vmem:[#allocation11 + $0xdc4] ss:$16 sps:$4 sm:$0xff]  }
 0x2ac   :  { %4554 = vmatpush1.bf16.msra.mxu0 %v6611_v10  ;;  %v6694_v10 = vld [vmem:[#allocation11 + $0xc2c] ss:$16 sps:$4 sm:$0xff]  }
 0x2ad   :  { %4882 = vmatpush1.bf16.msra.mxu1 %v6614_v11  ;;  %4555 = vmatprep.subr.bf16.mxu0 %v6619_v23  ;;  %v6692_v11 = vld [vmem:[#allocation11 + $0xc28] ss:$16 sps:$4 sm:$0xff]   ;;  %v6697_v23 = vld [vmem:[#allocation11 + $0xc44] ss:$16 sps:$4 sm:$0xff]  }
 0x2ae   :  { %4883 = vmatprep.subr.bf16.mxu1 %v6622_v37  ;;  %v6695_v37 = vld [vmem:[#allocation11 + $0xc40] ss:$16 sps:$4 sm:$0xff]  }
 0x2b0   :  { %4556 = vmatpush1.bf16.msra.mxu0 %v6617_v16  ;;  %v6698_v16 = vld [vmem:[#allocation11 + $0xc48] ss:$16 sps:$4 sm:$0xff]  }
 0x2b1   :  { %4884 = vmatpush1.bf16.msra.mxu1 %v6620_v17  ;;  %4557 = vmatprep.subr.bf16.mxu0 %v6625_v49  ;;  %v6703_v17 = vld [vmem:[#allocation11 + $0xc64] ss:$16 sps:$4 sm:$0xff]   ;;  %v6706_v49 = vld [vmem:[#allocation11 + $0xc6c] ss:$16 sps:$4 sm:$0xff]  }
 0x2b2   :  { %4885 = vmatprep.subr.bf16.mxu1 %v6628_v24  ;;  %v6701_v24 = vld [vmem:[#allocation11 + $0xc60] ss:$16 sps:$4 sm:$0xff]  }
 0x2b4   :  { %4558 = vmatpush1.bf16.msra.mxu0 %v6623_v36  ;;  %v6704_v36 = vld [vmem:[#allocation11 + $0xc68] ss:$16 sps:$4 sm:$0xff]  }
 0x2b5   :  { %4886 = vmatpush1.bf16.msra.mxu1 %v6626_v20  ;;  %4559 = vmatprep.subr.bf16.mxu0 %v6631_v25  ;;  %v6709_v20 = vld [vmem:[#allocation11 + $0xc84] ss:$16 sps:$4 sm:$0xff]   ;;  %v6712_v25 = vld [vmem:[#allocation11 + $0xc8c] ss:$16 sps:$4 sm:$0xff]  }
 0x2b6   :  { %4887 = vmatprep.subr.bf16.mxu1 %v6634_v22  ;;  %v6707_v22 = vld [vmem:[#allocation11 + $0xc80] ss:$16 sps:$4 sm:$0xff]  }
 0x2b8   :  { %4560 = vmatpush1.bf16.msra.mxu0 %v6629_v19  ;;  %v6710_v19 = vld [vmem:[#allocation11 + $0xc88] ss:$16 sps:$4 sm:$0xff]  }
 0x2b9   :  { %4888 = vmatpush1.bf16.msra.mxu1 %v6632_v26  ;;  %4561 = vmatprep.subr.bf16.mxu0 %v6637_v4  ;;  %v6715_v26 = vld [vmem:[#allocation11 + $0xca4] ss:$16 sps:$4 sm:$0xff]   ;;  %v6718_v4 = vld [vmem:[#allocation11 + $0xcac] ss:$16 sps:$4 sm:$0xff]  }
 0x2ba   :  { %4889 = vmatprep.subr.bf16.mxu1 %v6640_v30  ;;  %v6713_v30 = vld [vmem:[#allocation11 + $0xca0] ss:$16 sps:$4 sm:$0xff]  }
 0x2bc   :  { %4562 = vmatpush1.bf16.msra.mxu0 %v6635_v32  ;;  %v6716_v32 = vld [vmem:[#allocation11 + $0xca8] ss:$16 sps:$4 sm:$0xff]  }
 0x2bd   :  { %4890 = vmatpush1.bf16.msra.mxu1 %v6638_v33  ;;  %4563 = vmatprep.subr.bf16.mxu0 %v6643_v34  ;;  %v6721_v33 = vld [vmem:[#allocation11 + $0xcc4] ss:$16 sps:$4 sm:$0xff]   ;;  %v6724_v34 = vld [vmem:[#allocation11 + $0xccc] ss:$16 sps:$4 sm:$0xff]  }
 0x2be   :  { %4891 = vmatprep.subr.bf16.mxu1 %v6646_v38  ;;  %v6719_v38 = vld [vmem:[#allocation11 + $0xcc0] ss:$16 sps:$4 sm:$0xff]  }
 0x2c0   :  { %4564 = vmatpush1.bf16.msra.mxu0 %v6641_v39  ;;  %v6722_v39 = vld [vmem:[#allocation11 + $0xcc8] ss:$16 sps:$4 sm:$0xff]  }
 0x2c1   :  { %4892 = vmatpush1.bf16.msra.mxu1 %v6644_v41  ;;  %4565 = vmatprep.subr.bf16.mxu0 %v6649_v47  ;;  %v6727_v41 = vld [vmem:[#allocation11 + $0xce4] ss:$16 sps:$4 sm:$0xff]   ;;  %v6730_v47 = vld [vmem:[#allocation11 + $0xcec] ss:$16 sps:$4 sm:$0xff]  }
 0x2c2   :  { %4893 = vmatprep.subr.bf16.mxu1 %v6652_v35  ;;  %v6725_v35 = vld [vmem:[#allocation11 + $0xce0] ss:$16 sps:$4 sm:$0xff]  }
 0x2c4   :  { %4566 = vmatpush1.bf16.msra.mxu0 %v6647_v14  ;;  %v6728_v14 = vld [vmem:[#allocation11 + $0xce8] ss:$16 sps:$4 sm:$0xff]  }
 0x2c5   :  { %4894 = vmatpush1.bf16.msra.mxu1 %v6650_v8  ;;  %4567 = vmatprep.subr.bf16.mxu0 %v6655_v42  ;;  %v6733_v8 = vld [vmem:[#allocation11 + $0xd04] ss:$16 sps:$4 sm:$0xff]   ;;  %v6736_v42 = vld [vmem:[#allocation11 + $0xd0c] ss:$16 sps:$4 sm:$0xff]  }
 0x2c6   :  { %4895 = vmatprep.subr.bf16.mxu1 %v6658_v7  ;;  %v6731_v7 = vld [vmem:[#allocation11 + $0xd00] ss:$16 sps:$4 sm:$0xff]  }
 0x2c8   :  { %4568 = vmatpush1.bf16.msra.mxu0 %v6653_v43  ;;  %v6734_v43 = vld [vmem:[#allocation11 + $0xd08] ss:$16 sps:$4 sm:$0xff]  }
 0x2c9   :  { %4896 = vmatpush1.bf16.msra.mxu1 %v6656_v28  ;;  %4569 = vmatprep.subr.bf16.mxu0 %v6661_v53  ;;  %v6739_v28 = vld [vmem:[#allocation11 + $0xd24] ss:$16 sps:$4 sm:$0xff]   ;;  %v6742_v53 = vld [vmem:[#allocation11 + $0xd2c] ss:$16 sps:$4 sm:$0xff]  }
 0x2ca   :  { %4897 = vmatprep.subr.bf16.mxu1 %v6664_v55  ;;  %v6737_v55 = vld [vmem:[#allocation11 + $0xd20] ss:$16 sps:$4 sm:$0xff]  }
 0x2cc   :  { %4570 = vmatpush1.bf16.msra.mxu0 %v6659_v31  ;;  %v6740_v31 = vld [vmem:[#allocation11 + $0xd28] ss:$16 sps:$4 sm:$0xff]  }
 0x2cd   :  { %4898 = vmatpush1.bf16.msra.mxu1 %v6662_v18  ;;  %4571 = vmatprep.subr.bf16.mxu0 %v6667_v46  ;;  %v6745_v18 = vld [vmem:[#allocation11 + $0xd44] ss:$16 sps:$4 sm:$0xff]   ;;  %v6748_v46 = vld [vmem:[#allocation11 + $0xd4c] ss:$16 sps:$4 sm:$0xff]  }
 0x2ce   :  { %4899 = vmatprep.subr.bf16.mxu1 %v6670_v56  ;;  %v6743_v56 = vld [vmem:[#allocation11 + $0xd40] ss:$16 sps:$4 sm:$0xff]  }
 0x2d0   :  { %4572 = vmatpush1.bf16.msra.mxu0 %v6665_v57  ;;  %v6746_v57 = vld [vmem:[#allocation11 + $0xd48] ss:$16 sps:$4 sm:$0xff]  }
 0x2d1   :  { %4900 = vmatpush1.bf16.msra.mxu1 %v6668_v58  ;;  %4573 = vmatprep.subr.bf16.mxu0 %v6673_v2  ;;  %v6751_v58 = vld [vmem:[#allocation11 + $0xd64] ss:$16 sps:$4 sm:$0xff]   ;;  %v6754_v2 = vld [vmem:[#allocation11 + $0xd6c] ss:$16 sps:$4 sm:$0xff]  }
 0x2d2   :  { %4901 = vmatprep.subr.bf16.mxu1 %v6676_v15  ;;  %v6749_v15 = vld [vmem:[#allocation11 + $0xd60] ss:$16 sps:$4 sm:$0xff]  }
 0x2d4   :  { %4574 = vmatpush1.bf16.msra.mxu0 %v6671_v59  ;;  %v6752_v59 = vld [vmem:[#allocation11 + $0xd68] ss:$16 sps:$4 sm:$0xff]  }
 0x2d5   :  { %4902 = vmatpush1.bf16.msra.mxu1 %v6674_v40  ;;  %4575 = vmatprep.subr.bf16.mxu0 %v6679_v0  ;;  %v6757_v40 = vld [vmem:[#allocation11 + $0xd84] ss:$16 sps:$4 sm:$0xff]   ;;  %v6760_v0 = vld [vmem:[#allocation11 + $0xd8c] ss:$16 sps:$4 sm:$0xff]  }
 0x2d6   :  { %4903 = vmatprep.subr.bf16.mxu1 %v6682_v12  ;;  %v6755_v12 = vld [vmem:[#allocation11 + $0xd80] ss:$16 sps:$4 sm:$0xff]  }
 0x2d8   :  { %4576 = vmatpush1.bf16.msra.mxu0 %v6677_v29  ;;  %v6758_v29 = vld [vmem:[#allocation11 + $0xd88] ss:$16 sps:$4 sm:$0xff]  }
 0x2d9   :  { %4904 = vmatpush1.bf16.msra.mxu1 %v6680_v48  ;;  %4586 = vmatprep.subr.bf16.mxu0 %v6685_v13  ;;  %v6766_v48 = vld [vmem:[#allocation11 + $0xdac] ss:$16 sps:$4 sm:$0xff]   ;;  %v6761_v13 = vld [vmem:[#allocation11 + $0xda0] ss:$16 sps:$4 sm:$0xff]  }
 0x2da   :  { %4914 = vmatprep.subr.bf16.mxu1 %v6688_v52  ;;  %v6764_v52 = vld [vmem:[#allocation11 + $0xda8] ss:$16 sps:$4 sm:$0xff]  }
 0x2db   :  { %4578 = vmatmul.mubr.bf16.vlgmr.msra.gmra.mrb[32].mxu0 %v1308_v5 }
 0x2dc   :  { %4906 = vmatmul.mubr.bf16.vlgmr.msra.gmra.mrb[32].mxu1 %v1308_v5  ;;  %4587 = vmatpush1.bf16.msra.mxu0 %v6683_v54  ;;  %v6772_v54 = vld [vmem:[#allocation11 + $0xdcc] ss:$16 sps:$4 sm:$0xff]   ;;  %v6767_v5 = vld [vmem:[#allocation11 + $0xdc0] ss:$16 sps:$4 sm:$0xff]  }
 0x2dd   :  { %4618 = vmatprep.mubr.bf16.mxu0 %v1311_v9  ;;  %4915 = vmatpush1.bf16.msra.mxu1 %v6686_v6  ;;  %v6770_v6 = vld [vmem:[#allocation11 + $0xdc8] ss:$16 sps:$4 sm:$0xff]  }
 0x2de   :  { %4946 = vmatprep.mubr.bf16.mxu1 %v1311_v9  ;;  %4588 = vmatprep.subr.bf16.mxu0 %v6691_v21  ;;  %v6775_v21 = vld [vmem:[#allocation11 + $0xde4] ss:$16 sps:$4 sm:$0xff]   ;;  %v6778_v9 = vld [vmem:[#allocation11 + $0xdec] ss:$16 sps:$4 sm:$0xff]  }
 0x2df   :  { %4916 = vmatprep.subr.bf16.mxu1 %v6694_v10  ;;  %v6773_v10 = vld [vmem:[#allocation11 + $0xde0] ss:$16 sps:$4 sm:$0xff]  }
 0x2e0   :  { %4589 = vmatpush1.bf16.msra.mxu0 %v6689_v45  ;;  %v1294_v45 = vmax.f32 %v7427_v27, 0.0  ;;  %v6790_v27 = vld [vmem:[#allocation11 + $0xe2c] ss:$16 sps:$4 sm:$0xff]  }
 0x2e1   :  { %4917 = vmatpush1.bf16.msra.mxu1 %v6692_v11  ;;  %4590 = vmatprep.subr.bf16.mxu0 %v6697_v23  ;;  %v6776_v11 = vld [vmem:[#allocation11 + $0xde8] ss:$16 sps:$4 sm:$0xff]   ;;  %v6781_v23 = vld [vmem:[#allocation11 + $0xe04] ss:$16 sps:$4 sm:$0xff]  }
 0x2e2   :  { %4918 = vmatprep.subr.bf16.mxu1 %v6700_v44  ;;  %v6784_v44 = vld [vmem:[#allocation11 + $0xe0c] ss:$16 sps:$4 sm:$0xff]  }
 0x2e4   :  { %4591 = vmatpush1.bf16.msra.mxu0 %v6695_v37  ;;  %v1297_v37 = vmax.f32 %v7438_v63, 0.0  ;;  %v6796_v63 = vld [vmem:[#allocation11 + $0xe4c] ss:$16 sps:$4 sm:$0xff]  }
 0x2e5   :  { %4919 = vmatpush1.bf16.msra.mxu1 %v6698_v16  ;;  %4592 = vmatprep.subr.bf16.mxu0 %v6703_v17  ;;  %v6779_v16 = vld [vmem:[#allocation11 + $0xe00] ss:$16 sps:$4 sm:$0xff]   ;;  %v1310_v17 = vpack.c.bf16 %v1294_v45, %v1294_v45 }
 0x2e6   :  { %4920 = vmatprep.subr.bf16.mxu1 %v6706_v49  ;;  %v6782_v49 = vld [vmem:[#allocation11 + $0xe08] ss:$16 sps:$4 sm:$0xff]   ;;  %v6858_v45 = vld [vmem:[%s7578_s7 + $0xc0] sm:$0xff]  }
 0x2e8   :  { %4593 = vmatpush1.bf16.msra.mxu0 %v6701_v24  ;;  %v6787_v24 = vld [vmem:[#allocation11 + $0xe24] ss:$16 sps:$4 sm:$0xff]  }
 0x2e9   :  { %4921 = vmatpush1.bf16.msra.mxu1 %v6704_v36  ;;  %4594 = vmatprep.subr.bf16.mxu0 %v6709_v20  ;;  %v1313_v36 = vpack.c.bf16 %v1297_v37, %v1297_v37  ;;  %v6785_v20 = vld [vmem:[#allocation11 + $0xe20] ss:$16 sps:$4 sm:$0xff]   ;;  %v6862_v37 = vld [vmem:[%s7578_s7 + $0xc8] sm:$0xff]  }
 0x2ea   :  { %4922 = vmatprep.subr.bf16.mxu1 %v6712_v25  ;;  %v6788_v25 = vld [vmem:[#allocation11 + $0xe28] ss:$16 sps:$4 sm:$0xff]  }
 0x2ec   :  { %4595 = vmatpush1.bf16.msra.mxu0 %v6707_v22  ;;  %v6793_v22 = vld [vmem:[#allocation11 + $0xe44] ss:$16 sps:$4 sm:$0xff]  }
 0x2ed   :  { %4923 = vmatpush1.bf16.msra.mxu1 %v6710_v19  ;;  %4596 = vmatprep.subr.bf16.mxu0 %v6715_v26  ;;  %v6791_v19 = vld [vmem:[#allocation11 + $0xe40] ss:$16 sps:$4 sm:$0xff]   ;;  %v6794_v26 = vld [vmem:[#allocation11 + $0xe48] ss:$16 sps:$4 sm:$0xff]  }
 0x2ee   :  { %4924 = vmatprep.subr.bf16.mxu1 %v6718_v4  ;;  %v6799_v4 = vld [vmem:[#allocation11 + $0xe64] ss:$16 sps:$4 sm:$0xff]  }
 0x2f0   :  { %4597 = vmatpush1.bf16.msra.mxu0 %v6713_v30  ;;  %v6802_v30 = vld [vmem:[#allocation11 + $0xe6c] ss:$16 sps:$4 sm:$0xff]  }
 0x2f1   :  { %4925 = vmatpush1.bf16.msra.mxu1 %v6716_v32  ;;  %4598 = vmatprep.subr.bf16.mxu0 %v6721_v33  ;;  %v6797_v32 = vld [vmem:[#allocation11 + $0xe60] ss:$16 sps:$4 sm:$0xff]   ;;  %v6800_v33 = vld [vmem:[#allocation11 + $0xe68] ss:$16 sps:$4 sm:$0xff]  }
 0x2f2   :  { %4926 = vmatprep.subr.bf16.mxu1 %v6724_v34  ;;  %v6805_v34 = vld [vmem:[#allocation11 + $0xe84] ss:$16 sps:$4 sm:$0xff]  }
 0x2f4   :  { %4599 = vmatpush1.bf16.msra.mxu0 %v6719_v38  ;;  %v6808_v38 = vld [vmem:[#allocation11 + $0xe8c] ss:$16 sps:$4 sm:$0xff]  }
 0x2f5   :  { %4927 = vmatpush1.bf16.msra.mxu1 %v6722_v39  ;;  %4600 = vmatprep.subr.bf16.mxu0 %v6727_v41  ;;  %v6803_v39 = vld [vmem:[#allocation11 + $0xe80] ss:$16 sps:$4 sm:$0xff]   ;;  %v6806_v41 = vld [vmem:[#allocation11 + $0xe88] ss:$16 sps:$4 sm:$0xff]  }
 0x2f6   :  { %4928 = vmatprep.subr.bf16.mxu1 %v6730_v47  ;;  %v6811_v47 = vld [vmem:[#allocation11 + $0xea4] ss:$16 sps:$4 sm:$0xff]  }
 0x2f8   :  { %4601 = vmatpush1.bf16.msra.mxu0 %v6725_v35  ;;  %v6814_v35 = vld [vmem:[#allocation11 + $0xeac] ss:$16 sps:$4 sm:$0xff]  }
 0x2f9   :  { %4929 = vmatpush1.bf16.msra.mxu1 %v6728_v14  ;;  %4602 = vmatprep.subr.bf16.mxu0 %v6733_v8  ;;  %v6809_v14 = vld [vmem:[#allocation11 + $0xea0] ss:$16 sps:$4 sm:$0xff]   ;;  %v6812_v8 = vld [vmem:[#allocation11 + $0xea8] ss:$16 sps:$4 sm:$0xff]  }
 0x2fa   :  { %4930 = vmatprep.subr.bf16.mxu1 %v6736_v42  ;;  %v6817_v42 = vld [vmem:[#allocation11 + $0xec4] ss:$16 sps:$4 sm:$0xff]  }
 0x2fc   :  { %4603 = vmatpush1.bf16.msra.mxu0 %v6731_v7  ;;  %v6820_v7 = vld [vmem:[#allocation11 + $0xecc] ss:$16 sps:$4 sm:$0xff]  }
 0x2fd   :  { %4931 = vmatpush1.bf16.msra.mxu1 %v6734_v43  ;;  %4604 = vmatprep.subr.bf16.mxu0 %v6739_v28  ;;  %v6815_v43 = vld [vmem:[#allocation11 + $0xec0] ss:$16 sps:$4 sm:$0xff]   ;;  %v6818_v28 = vld [vmem:[#allocation11 + $0xec8] ss:$16 sps:$4 sm:$0xff]  }
 0x2fe   :  { %4932 = vmatprep.subr.bf16.mxu1 %v6742_v53  ;;  %v6823_v53 = vld [vmem:[#allocation11 + $0xee4] ss:$16 sps:$4 sm:$0xff]  }
 0x300   :  { %4605 = vmatpush1.bf16.msra.mxu0 %v6737_v55  ;;  %v6826_v55 = vld [vmem:[#allocation11 + $0xeec] ss:$16 sps:$4 sm:$0xff]  }
 0x301   :  { %4933 = vmatpush1.bf16.msra.mxu1 %v6740_v31  ;;  %4606 = vmatprep.subr.bf16.mxu0 %v6745_v18  ;;  %v6821_v31 = vld [vmem:[#allocation11 + $0xee0] ss:$16 sps:$4 sm:$0xff]   ;;  %v6824_v18 = vld [vmem:[#allocation11 + $0xee8] ss:$16 sps:$4 sm:$0xff]  }
 0x302   :  { %4934 = vmatprep.subr.bf16.mxu1 %v6748_v46  ;;  %v6829_v46 = vld [vmem:[#allocation11 + $0xf04] ss:$16 sps:$4 sm:$0xff]  }
 0x304   :  { %4607 = vmatpush1.bf16.msra.mxu0 %v6743_v56  ;;  %v6832_v56 = vld [vmem:[#allocation11 + $0xf0c] ss:$16 sps:$4 sm:$0xff]  }
 0x305   :  { %4935 = vmatpush1.bf16.msra.mxu1 %v6746_v57  ;;  %4608 = vmatprep.subr.bf16.mxu0 %v6751_v58  ;;  %v6827_v57 = vld [vmem:[#allocation11 + $0xf00] ss:$16 sps:$4 sm:$0xff]   ;;  %v6830_v58 = vld [vmem:[#allocation11 + $0xf08] ss:$16 sps:$4 sm:$0xff]  }
 0x306   :  { %4936 = vmatprep.subr.bf16.mxu1 %v6754_v2  ;;  %v6835_v2 = vld [vmem:[#allocation11 + $0xf24] ss:$16 sps:$4 sm:$0xff]  }
 0x308   :  { %4609 = vmatpush1.bf16.msra.mxu0 %v6749_v15  ;;  %v6838_v15 = vld [vmem:[#allocation11 + $0xf2c] ss:$16 sps:$4 sm:$0xff]  }
 0x309   :  { %4937 = vmatpush1.bf16.msra.mxu1 %v6752_v59  ;;  %4610 = vmatprep.subr.bf16.mxu0 %v6757_v40  ;;  %v6833_v59 = vld [vmem:[#allocation11 + $0xf20] ss:$16 sps:$4 sm:$0xff]   ;;  %v6836_v40 = vld [vmem:[#allocation11 + $0xf28] ss:$16 sps:$4 sm:$0xff]  }
 0x30a   :  { %4938 = vmatprep.subr.bf16.mxu1 %v6760_v0  ;;  %v6841_v0 = vld [vmem:[#allocation11 + $0xf44] ss:$16 sps:$4 sm:$0xff]  }
 0x30c   :  { %4611 = vmatpush1.bf16.msra.mxu0 %v6755_v12  ;;  %v6844_v12 = vld [vmem:[#allocation11 + $0xf4c] ss:$16 sps:$4 sm:$0xff]  }
 0x30d   :  { %4939 = vmatpush1.bf16.msra.mxu1 %v6758_v29  ;;  %4612 = vmatprep.subr.bf16.mxu0 %v6763_v62  ;;  %v6839_v29 = vld [vmem:[#allocation11 + $0xf40] ss:$16 sps:$4 sm:$0xff]   ;;  %v6842_v62 = vld [vmem:[#allocation11 + $0xf48] ss:$16 sps:$4 sm:$0xff]  }
 0x30e   :  { %4940 = vmatprep.subr.bf16.mxu1 %v6766_v48  ;;  %v6847_v48 = vld [vmem:[#allocation11 + $0xf64] ss:$16 sps:$4 sm:$0xff]  }
 0x310   :  { %4613 = vmatpush1.bf16.msra.mxu0 %v6761_v13  ;;  %v6850_v13 = vld [vmem:[#allocation11 + $0xf6c] ss:$16 sps:$4 sm:$0xff]  }
 0x311   :  { %4941 = vmatpush1.bf16.msra.mxu1 %v6764_v52  ;;  %4614 = vmatprep.subr.bf16.mxu0 %v6769_v3  ;;  %v6845_v52 = vld [vmem:[#allocation11 + $0xf60] ss:$16 sps:$4 sm:$0xff]   ;;  %v6848_v3 = vld [vmem:[#allocation11 + $0xf68] ss:$16 sps:$4 sm:$0xff]  }
 0x312   :  { %4942 = vmatprep.subr.bf16.mxu1 %v6772_v54  ;;  %v6853_v54 = vld [vmem:[#allocation11 + $0xf84] ss:$16 sps:$4 sm:$0xff]  }
 0x314   :  { %4615 = vmatpush1.bf16.msra.mxu0 %v6767_v5  ;;  %v6856_v5 = vld [vmem:[#allocation11 + $0xf8c] ss:$16 sps:$4 sm:$0xff]  }
 0x315   :  { %4943 = vmatpush1.bf16.msra.mxu1 %v6770_v6  ;;  %4616 = vmatprep.subr.bf16.mxu0 %v6775_v21  ;;  %v6851_v6 = vld [vmem:[#allocation11 + $0xf80] ss:$16 sps:$4 sm:$0xff]   ;;  %v1296_v21 = vmax.f32 %v7435_v60, 0.0 }
 0x316   :  { %4944 = vmatprep.subr.bf16.mxu1 %v6778_v9  ;;  %v6854_v9 = vld [vmem:[#allocation11 + $0xf88] ss:$16 sps:$4 sm:$0xff]   ;;  %v6860_v60 = vld [vmem:[%s7578_s7 + $0x80] sm:$0xff]  }
 0x318   :  { %4617 = vmatpush1.bf16.msra.mxu0 %v6773_v10  ;;  %v6857_v10 = vld [vmem:[%s7578_s7 + $0x40] sm:$0xff]  }
 0x319   :  { %4945 = vmatpush1.bf16.msra.mxu1 %v6776_v11  ;;  %4627 = vmatprep.subr.bf16.mxu0 %v6781_v23  ;;  %v6859_v11 = vld [vmem:[%s7578_s7] sm:$0xff]   ;;  %v1312_v23 = vpack.c.bf16 %v1296_v21, %v1296_v21 }
 0x31a   :  { %4955 = vmatprep.subr.bf16.mxu1 %v6784_v44  ;;  %v6861_v44 = vld [vmem:[%s7578_s7 + $0x48] sm:$0xff]  }
 0x31b   :  { %4619 = vmatmul.mubr.bf16.vlgmr.msra.gmra.mrb[32].mxu0 %v1310_v17 }
 0x31c   :  { %4947 = vmatmul.mubr.bf16.vlgmr.msra.gmra.mrb[32].mxu1 %v1310_v17  ;;  %4628 = vmatpush1.bf16.msra.mxu0 %v6779_v16  ;;  %v6863_v16 = vld [vmem:[%s7578_s7 + $0x8] sm:$0xff]  }
 0x31d   :  { %5952 = vmatprep.mubr.msk.bf16.mxu0 %vm4336_vm1, %v1313_v36  ;;  %4956 = vmatpush1.bf16.msra.mxu1 %v6782_v49  ;;  %v6864_v17 = vld [vmem:[%s7578_s7 + $0x88] sm:$0xff]   ;;  %v6865_v49 = vld [vmem:[%s7578_s7 + $0x50] sm:$0xff]  }
 0x31e   :  { %5953 = vmatprep.mubr.msk.bf16.mxu1 %vm4336_vm1, %v1313_v36  ;;  %4629 = vmatprep.subr.bf16.mxu0 %v6787_v24  ;;  %v6866_v24 = vld [vmem:[%s7578_s7 + $0xd0] sm:$0xff]  }
 0x31f   :  { %4957 = vmatprep.subr.bf16.mxu1 %v6790_v27  ;;  %v6867_v36 = vld [vmem:[%s7578_s7 + $0x10] sm:$0xff]  }
 0x320   :  { %4630 = vmatpush1.bf16.msra.mxu0 %v6785_v20  ;;  %v6868_v27 = vld [vmem:[%s7578_s7 + $0x90] sm:$0xff]   ;;  %v6869_v20 = vld [vmem:[%s7578_s7 + $0x58] sm:$0xff]  }
 0x321   :  { %4958 = vmatpush1.bf16.msra.mxu1 %v6788_v25  ;;  %4631 = vmatprep.subr.bf16.mxu0 %v6793_v22  ;;  %v6870_v25 = vld [vmem:[%s7578_s7 + $0xd8] sm:$0xff]  }
 0x322   :  { %4959 = vmatprep.subr.bf16.mxu1 %v6796_v63  ;;  %v6871_v22 = vld [vmem:[%s7578_s7 + $0x18] sm:$0xff]  }
 0x323   :  { %v6872_v63 = vld [vmem:[%s7578_s7 + $0x98] sm:$0xff]  }
 0x324   :  { %4632 = vmatpush1.bf16.msra.mxu0 %v6791_v19  ;;  %v6873_v19 = vld [vmem:[%s7578_s7 + $0x60] sm:$0xff]  }
 0x325   :  { %4960 = vmatpush1.bf16.msra.mxu1 %v6794_v26  ;;  %4633 = vmatprep.subr.bf16.mxu0 %v6799_v4  ;;  %v6874_v26 = vld [vmem:[%s7578_s7 + $0xe0] sm:$0xff]  }
 0x326   :  { %4961 = vmatprep.subr.bf16.mxu1 %v6802_v30  ;;  %v6875_v4 = vld [vmem:[%s7578_s7 + $0x20] sm:$0xff]  }
 0x327   :  { %v6876_v30 = vld [vmem:[%s7578_s7 + $0xa0] sm:$0xff]  }
 0x328   :  { %4634 = vmatpush1.bf16.msra.mxu0 %v6797_v32  ;;  %v6877_v32 = vld [vmem:[%s7578_s7 + $0x68] sm:$0xff]  }
 0x329   :  { %4962 = vmatpush1.bf16.msra.mxu1 %v6800_v33  ;;  %4635 = vmatprep.subr.bf16.mxu0 %v6805_v34  ;;  %v6878_v33 = vld [vmem:[%s7578_s7 + $0xe8] sm:$0xff]  }
 0x32a   :  { %4963 = vmatprep.subr.bf16.mxu1 %v6808_v38  ;;  %v6879_v34 = vld [vmem:[%s7578_s7 + $0x28] sm:$0xff]  }
 0x32b   :  { %v6880_v38 = vld [vmem:[%s7578_s7 + $0xa8] sm:$0xff]  }
 0x32c   :  { %4636 = vmatpush1.bf16.msra.mxu0 %v6803_v39  ;;  %v6881_v39 = vld [vmem:[%s7578_s7 + $0x70] sm:$0xff]  }
 0x32d   :  { %4964 = vmatpush1.bf16.msra.mxu1 %v6806_v41  ;;  %4637 = vmatprep.subr.bf16.mxu0 %v6811_v47  ;;  %v6882_v41 = vld [vmem:[%s7578_s7 + $0xf0] sm:$0xff]  }
 0x32e   :  { %4965 = vmatprep.subr.bf16.mxu1 %v6814_v35  ;;  %v6883_v47 = vld [vmem:[%s7578_s7 + $0x30] sm:$0xff]  }
 0x32f   :  { %v6884_v35 = vld [vmem:[%s7578_s7 + $0xb0] sm:$0xff]  }
 0x330   :  { %4638 = vmatpush1.bf16.msra.mxu0 %v6809_v14  ;;  %v6885_v14 = vld [vmem:[%s7578_s7 + $0x78] sm:$0xff]  }
 0x331   :  { %4966 = vmatpush1.bf16.msra.mxu1 %v6812_v8  ;;  %4639 = vmatprep.subr.bf16.mxu0 %v6817_v42  ;;  %v6886_v8 = vld [vmem:[%s7578_s7 + $0xf8] ss:$0 sps:$4 sm:$0x33]  }
 0x332   :  { %4967 = vmatprep.subr.bf16.mxu1 %v6820_v7  ;;  %v6887_v42 = vld [vmem:[%s7578_s7 + $0x38] sm:$0xff]  }
 0x333   :  { %v6888_v7 = vld [vmem:[%s7578_s7 + $0xb8] sm:$0xff]   ;;  %s7113_s7 = smov [#allocation16]  }
 0x334   :  { %4640 = vmatpush1.bf16.msra.mxu0 %v6815_v43  ;;  %v1814_v43 = vld [vmem:[#allocation13] sm:$0xf]  ;;  %s5359_s30 = sshll.u32 %s7113_s7, 4  ;;  %s5360_s30 = int_to_ptr.vmem [resolvable:$true] %s5359_s30 }
 0x335   :  { %4968 = vmatpush1.bf16.msra.mxu1 %v6818_v28  ;;  %4641 = vmatprep.subr.bf16.mxu0 %v6823_v53  ;;  %v1819_v28 = vrot.slane %v1814_v43, %v7369_v50  ;;  %v1827_v53 = vrot.slane %v1814_v43, %v7383_v61  ;;  %s7066_s18 = scalar_lea.vmem %s5360_s30, 64  ;;  %p7071_p9 = scmp.lt.s32.totalorder %s5360_s30, %s5360_s30 }
 0x336   :  { %4969 = vmatprep.subr.bf16.mxu1 %v6826_v55  ;;  %v1823_v55 = vrot.slane %v1814_v43, %v7372_v51  ;;  %p7067_p8 = scmp.ne.s32.totalorder %s5360_s30, %s7066_s18  ;;  %p7072_p10 = scmp.lt.s32.totalorder %s7066_s18, %s7066_s18 }
 0x338   :  { %4642 = vmatpush1.bf16.msra.mxu0 %v6821_v31  ;;  %v1831_v31 = vrot.slane %v1814_v43, %v7386_v1  ;;  %p7073_p11 = por %p7072_p10, %p7071_p9 }
 0x339   :  { %4970 = vmatpush1.bf16.msra.mxu1 %v6824_v18  ;;  %4643 = vmatprep.subr.bf16.mxu0 %v6829_v46 }
 0x33a   :  { %4971 = vmatprep.subr.bf16.mxu1 %v6832_v56  ;;  %p7074_p12 = pnand %p7073_p11, %p7067_p8 }
 0x33c   :  { %4644 = vmatpush1.bf16.msra.mxu0 %v6827_v57 }
 0x33d   :  { %4972 = vmatpush1.bf16.msra.mxu1 %v6830_v58  ;;  %4645 = vmatprep.subr.bf16.mxu0 %v6835_v2 }
 0x33e   :  { %4973 = vmatprep.subr.bf16.mxu1 %v6838_v15 }
 0x340   :  { %4646 = vmatpush1.bf16.msra.mxu0 %v6833_v59 }
 0x341   :  { %4974 = vmatpush1.bf16.msra.mxu1 %v6836_v40  ;;  %4647 = vmatprep.subr.bf16.mxu0 %v6841_v0 }
 0x342   :  { %4975 = vmatprep.subr.bf16.mxu1 %v6844_v12 }
 0x344   :  { %4648 = vmatpush1.bf16.msra.mxu0 %v6839_v29 }
 0x345   :  { %4976 = vmatpush1.bf16.msra.mxu1 %v6842_v62  ;;  %4649 = vmatprep.subr.bf16.mxu0 %v6847_v48 }
 0x346   :  { %4977 = vmatprep.subr.bf16.mxu1 %v6850_v13 }
 0x348   :  { %4650 = vmatpush1.bf16.msra.mxu0 %v6845_v52 }
 0x349   :  { %4978 = vmatpush1.bf16.msra.mxu1 %v6848_v3  ;;  %4651 = vmatprep.subr.bf16.mxu0 %v6853_v54 }
 0x34a   :  { %4979 = vmatprep.subr.bf16.mxu1 %v6856_v5  ;;  %v5954_v5 = vld [vmem:[#allocation14] ss:$0 sm:$0xff] }
 0x34c   :  { %4652 = vmatpush1.bf16.msra.mxu0 %v6851_v6 }
 0x34d   :  { %4980 = vmatpush1.bf16.msra.mxu1 %v6854_v9  ;;  %5988 = vmatprep.subr.bf16.mxu0 %v6857_v10 }
 0x34e   :  { %6010 = vmatprep.subr.bf16.mxu1 %v6858_v45 }
 0x34f   :  { %4660 = vmatmul.mubr.bf16.vlgmr.msra.gmra.mrb[32].mxu0 %v1312_v23 }
 0x350   :  { %4988 = vmatmul.mubr.bf16.vlgmr.msra.gmra.mrb[32].mxu1 %v1312_v23  ;;  %5989 = vmatpush3.bf16.msra.mxu0 %v6859_v11 }
 0x351   :  { %6011 = vmatpush3.bf16.msra.mxu1 %v6860_v60  ;;  %5990 = vmatprep.subr.bf16.mxu0 %v6861_v44 }
 0x352   :  { %6012 = vmatprep.subr.bf16.mxu1 %v6862_v37 }
 0x354   :  { %5991 = vmatpush3.bf16.msra.mxu0 %v6863_v16 }
 0x355   :  { %6013 = vmatpush3.bf16.msra.mxu1 %v6864_v17  ;;  %5992 = vmatprep.subr.bf16.mxu0 %v6865_v49 }
 0x356   :  { %6014 = vmatprep.subr.bf16.mxu1 %v6866_v24 }
 0x358   :  { %5993 = vmatpush3.bf16.msra.mxu0 %v6867_v36 }
 0x359   :  { %6015 = vmatpush3.bf16.msra.mxu1 %v6868_v27  ;;  %5994 = vmatprep.subr.bf16.mxu0 %v6869_v20 }
 0x35a   :  { %6016 = vmatprep.subr.bf16.mxu1 %v6870_v25 }
 0x35c   :  { %5995 = vmatpush3.bf16.msra.mxu0 %v6871_v22 }
 0x35d   :  { %6017 = vmatpush3.bf16.msra.mxu1 %v6872_v63  ;;  %5996 = vmatprep.subr.bf16.mxu0 %v6873_v19 }
 0x35e   :  { %6018 = vmatprep.subr.bf16.mxu1 %v6874_v26 }
 0x360   :  { %5997 = vmatpush3.bf16.msra.mxu0 %v6875_v4 }
 0x361   :  { %6019 = vmatpush3.bf16.msra.mxu1 %v6876_v30  ;;  %5998 = vmatprep.subr.bf16.mxu0 %v6877_v32 }
 0x362   :  { %6020 = vmatprep.subr.bf16.mxu1 %v6878_v33 }
 0x364   :  { %5999 = vmatpush3.bf16.msra.mxu0 %v6879_v34 }
 0x365   :  { %6021 = vmatpush3.bf16.msra.mxu1 %v6880_v38  ;;  %6000 = vmatprep.subr.bf16.mxu0 %v6881_v39 }
 0x366   :  { %6022 = vmatprep.subr.bf16.mxu1 %v6882_v41 }
 0x368   :  { %6001 = vmatpush3.bf16.msra.mxu0 %v6883_v47 }
 0x369   :  { %6023 = vmatpush3.bf16.msra.mxu1 %v6884_v35  ;;  %6002 = vmatprep.subr.bf16.mxu0 %v6885_v14 }
 0x36a   :  { %6092 = vmatprep.subr.msk.bf16.mxu1 %vm5267_vm2, %v6886_v8 }
 0x36c   :  { %6003 = vmatpush3.bf16.msra.mxu0 %v6887_v42 }
 0x36d   :  { %6025 = vmatpush3.bf16.msra.mxu1 %v6888_v7 }
 0x422   :  { %v4661_v18 = vpop.f32.mrb[32].mxu0 }
 0x423   :  { %v6032_v46 = vadd.f32 %v4661_v18, %v1819_v28  ;;  %v4989_v56 = vpop.f32.mrb[32].mxu1  ;;  %v4663_v57 = vpop.f32.mrb[33].mxu0 }
 0x424   :  { %v6034_v58 = vadd.f32 %v4989_v56, %v1827_v53  ;;  %v6033_v2 = vadd.f32 %v4663_v57, %v1823_v55  ;;  %v4991_v15 = vpop.f32.mrb[33].mxu1  ;;  %v4665_v59 = vpop.f32.mrb[34].mxu0 }
 0x425   :  { %v4996_v40 = vmax.f32 %v6032_v46, 0.0  ;;  %v6035_v0 = vadd.f32 %v4991_v15, %v1831_v31  ;;  %v4993_v12 = vpop.f32.mrb[34].mxu1  ;;  %v4666_v29 = vpop.f32.mrb[35].mxu0 }
 0x426   :  { %v4998_v62 = vmax.f32 %v6034_v58, 0.0  ;;  %v4997_v50 = vmax.f32 %v6033_v2, 0.0  ;;  %v4994_v48 = vpop.f32.mrb[35].mxu1 }
 0x427   :  { %v4999_v61 = vmax.f32 %v6035_v0, 0.0  ;;  %v5000_v51 = vpack.c.bf16 %v4996_v40, %v4996_v40 }
 0x428   :  { %v5001_v13 = vpack.c.bf16 %v4997_v50, %v4997_v50  ;;  %v5002_v52 = vpack.c.bf16 %v4998_v62, %v4998_v62 }
 0x429   :  { %v5003_v1 = vpack.c.bf16 %v4999_v61, %v4999_v61 }
 0x42a   :  { %5303 = vmatprep.mubr.bf16.mxu0 %v5001_v13 }
 0x42b   :  { %5987 = vmatprep.mubr.msk.bf16.mxu1 %vm5263_vm3, %v5003_v1  ;;  %5304 = vmatmul.mubr.bf16.vlgmr.msra.gmra.mrb[36].mxu0 %v5000_v51 }
 0x42c   :  { %5344 = vmatmul.mubr.bf16.vlgmr.msra.gmra.mrb[36].mxu1 %v5002_v52 }
 0x4fe   :  { %v6004_v3 = vpop.f32.mrb[36].mxu0 }
 0x4ff   :  { %v6026_v54 = vpop.f32.mrb[36].mxu1  ;;  %v6005_v6 = vpop.f32.mrb[37].mxu0 }
 0x500   :  { %v6006_v21 = vadd.f32 %v6005_v6, %v6004_v3  ;;  %v6027_v9 = vpop.f32.mrb[37].mxu1  ;;  %v6007_v10 = vpop.f32.mrb[38].mxu0 }
 0x501   :  { %v6028_v45 = vadd.f32 %v6027_v9, %v6026_v54  ;;  %v6029_v11 = vpop.f32.mrb[38].mxu1  ;;  %v6008_v23 = vpop.f32.mrb[39].mxu0 }
 0x502   :  { %v5306_v60 = vadd.f32 %v6006_v21, %v5954_v5  ;;  %v6030_v44 = vpop.f32.mrb[39].mxu1 }
 0x504   :  { %v5346_v37 = vadd.f32 %v6028_v45, %v5306_v60 }
 0x506   :  { %5352 = vst.msk [vmem:[#allocation16] sm:$0xf] %vm5351_vm4, %v5346_v37 }
 0x507   :  { %7077 = shalt.err (!%p7074_p12)
}
 0x508   :  { %s7078_s21 = scalar_lea.hbm %s7580_s9, 64 }
 0x509   :  { %p7079_p13 = scmp.ne.s32.totalorder %s7580_s9, %s7078_s21  ;;  %p7082_p0 = scmp.lt.u32.totalorder %s7078_s21, %s7580_s9 }
 0x50b   :  { %p7084_p1 = pnand %p7082_p0, %p7079_p13 }
 0x50d   :  { %7087 = shalt.err (!%p7084_p1)
}
 0x50e   :  { %5362 = dma.vmem_to_hbm [thread:$0]  %s5360_s30, 64, %s7580_s9, [#allocation4]  }
 0x50f   :  { %7098 = dma.done.wait [#allocation4], 64  }
 0x510   :  { %7099 = vsyncadd [#allocation4], 4294967232 }
 0x511   :  { %5366 = vsyncpa [#allocation3], 1 }
 0x512   :  { %5367 = vsyncpa [#allocation6], 1 }
 0x513   :  { %5368 = vsyncpa [#allocation9], 1 }
 0x514   :  { %5369 = vsyncpa [#allocation12], 1 }
 0x515   :  { %5370 = vsyncpa [#allocation15], 1 }
 0x516   :  { %5371 = vsyncpa [#allocation4], 1 }

</bundles_post_ra>
